<compile_context>
chip_gen: v5e
topology: v5e:2x2
jax: 0.10.0
libtpu: 0.0.40
codegen_flags: <defaults>
</compile_context>

<pallas_src>
import functools
import math

import jax
import jax.numpy as jnp
import numpy as np
from jax.experimental import pallas as pl
from jax.experimental.pallas import tpu as pltpu


# ----------------------------- small helpers ------------------------------- #

def _round_up(x, m):
    return ((x + m - 1) // m) * m


def _layer_norm(x, w, b, eps=1e-5):
    # statistics kept in f32
    mu = jnp.mean(x, axis=-1, keepdims=True)
    var = jnp.mean(jnp.square(x - mu), axis=-1, keepdims=True)
    return (x - mu) * jax.lax.rsqrt(var + eps) * w + b


def _gelu(x):
    # exact erf GELU (PyTorch nn.GELU default, approximate='none')
    return 0.5 * x * (1.0 + jax.lax.erf(x * (1.0 / math.sqrt(2.0))))


# ------------------------ kernel 1: transformer stack ----------------------- #

def gpt_layers_kernel(h_ref,
                      ln1_w_ref, ln1_b_ref, ln2_w_ref, ln2_b_ref,
                      wq_ref, bq_ref, wk_ref, bk_ref, wv_ref, bv_ref,
                      wo_ref, out_b_ref,
                      fc1_w_ref, fc1_b_ref, fc2_w_ref, fc2_b_ref,
                      hout_ref,
                      *, num_heads, embed_dim, seq_len, batch_tile):
    l = pl.program_id(1)
    E, H, S, Bt = embed_dim, num_heads, seq_len, batch_tile
    Dh = E // H
    scale = 1.0 / math.sqrt(Dh)
    f32, bf16 = jnp.float32, jnp.bfloat16

    # The output block (constant index over the layer axis) is the residual
    # carry: load the bf16 input once at layer 0 and keep it f32 from then on.
    @pl.when(l == 0)
    def _():
        hout_ref[...] = h_ref[...].astype(f32)

    h = hout_ref[...]                                     # (Bt*S, E) f32

    # Causal mask via iota comparison; finite negative (safe even if a row were
    # ever fully masked).
    row = jax.lax.broadcasted_iota(jnp.int32, (S, S), 0)
    col = jax.lax.broadcasted_iota(jnp.int32, (S, S), 1)
    causal = (col <= row)[None, :, :]                     # (1, S, S)

    # ---- attention (residual adds onto ln_1(x): matches the spec) ----------
    xn = _layer_norm(h, ln1_w_ref[0], ln1_b_ref[0])       # (Bt*S, E) f32
    xn_b = xn.astype(bf16)

    a = jnp.zeros((Bt * S, E), f32)
    # Static loop over heads ONLY (H is small); each head's work is fully
    # batched over Bt.  Per-head weights are indexed on leading axes of the
    # weight refs -> no sub-128-lane slicing, no relayouts, no concatenates.
    for hh in range(H):
        qh = (jnp.dot(xn_b, wq_ref[0, hh], preferred_element_type=f32)
              + bq_ref[0, hh]).astype(bf16).reshape(Bt, S, Dh)
        kh = (jnp.dot(xn_b, wk_ref[0, hh], preferred_element_type=f32)
              + bk_ref[0, hh]).astype(bf16).reshape(Bt, S, Dh)
        vh = (jnp.dot(xn_b, wv_ref[0, hh], preferred_element_type=f32)
              + bv_ref[0, hh]).astype(bf16).reshape(Bt, S, Dh)

        s = jnp.einsum('bqd,bkd->bqk', qh, kh,
                       preferred_element_type=f32) * scale     # (Bt, S, S) f32
        s = jnp.where(causal, s, -1e30)
        s = s - jnp.max(s, axis=-1, keepdims=True)
        p = jnp.exp(s)
        p = p * pl.reciprocal(jnp.sum(p, axis=-1, keepdims=True), approx=True)

        oh = jnp.einsum('bqk,bkd->bqd', p.astype(bf16), vh,
                        preferred_element_type=f32)            # (Bt, S, Dh)
        # Fold this head straight through its slice of the output projection
        # (sum-accumulation instead of a concat + fused out-proj).
        a = a + jnp.dot(oh.reshape(Bt * S, Dh).astype(bf16), wo_ref[0, hh],
                        preferred_element_type=f32)
    a = a + out_b_ref[0]
    x = xn + a                       # residual onto ln_1(x) (intentional, spec)

    # ---- MLP ----
    xn2 = _layer_norm(x, ln2_w_ref[0], ln2_b_ref[0])
    m = jnp.dot(xn2.astype(bf16), fc1_w_ref[0],
                preferred_element_type=f32) + fc1_b_ref[0]
    m = _gelu(m).astype(bf16)                        # (Bt*S, 4E) bf16 operand
    m = jnp.dot(m, fc2_w_ref[0], preferred_element_type=f32) + fc2_b_ref[0]

    hout_ref[...] = x + m            # f32 carry to layer l+1 / final output


# ----------------- kernel 2: final LN + LM head + classifier ---------------- #

def head_kernel(h_ref, lnf_w_ref, lnf_b_ref, head_w_ref, clf_w_ref, clf_b_ref,
                logits_ref, clf_ref, *, seq_len, batch_tile):
    S, Bt = seq_len, batch_tile
    f32, bf16 = jnp.float32, jnp.bfloat16

    hf = _layer_norm(h_ref[...], lnf_w_ref[...], lnf_b_ref[...])  # (Bt*S, E) f32
    hf_b = hf.astype(bf16)

    # Lane-dense (padded-vocab) LM-head store.
    logits_ref[...] = jnp.dot(hf_b, head_w_ref[...],
                              preferred_element_type=f32)

    # Batched classifier: one (Bt, E) x (E, Cp) matmul + one dense store.
    pooled = jnp.mean(hf.reshape(Bt, S, -1), axis=1)              # (Bt, E) f32
    clf = (jnp.dot(pooled.astype(bf16), clf_w_ref[...],
                   preferred_element_type=f32) + clf_b_ref[...])  # (Bt, Cp)
    clf_ref[...] = clf.reshape(1, Bt, -1)


# ------------------------------ JAX wrapper --------------------------------- #

def image_gpt_forward(x_tokens, p, *, num_layers, num_heads, classify=True,
                      batch_tile=None):
    """x_tokens: int32 [seq, batch] (PyTorch convention)."""
    S, B = x_tokens.shape
    E = p['tok_emb'].shape[1]
    V = p['head_w'].shape[0]
    C = p['clf_w'].shape[0]
    H = num_heads
    Dh = E // H
    L = num_layers
    Vp = _round_up(V, 128)       # lane-dense LM-head output
    Cp = _round_up(C, 128)       # lane-dense classifier output
    f32, bf16 = jnp.float32, jnp.bfloat16

    # Default (fast path on v5e/v6e): whole batch in one tile, so the layer
    # weights stream from HBM exactly once.  On v7x pass batch_tile=B//2 so the
    # "parallel" batch axis shards across both TensorCores.
    Bt = B if batch_tile is None else batch_tile
    assert B % Bt == 0, "batch_tile must divide the batch"
    assert (Bt * S) % 8 == 0, "batch_tile*seq must be sublane aligned"

    # ---- embedding glue (plain JAX; gathers stay outside the kernel) --------
    tok = jnp.take(p['tok_emb'], x_tokens, axis=0)                  # (S, B, E)
    sos = jnp.broadcast_to(p['sos'][None, None, :], (1, B, E))
    h = jnp.concatenate([sos, tok[:-1]], axis=0)                    # shift+SOS
    h = h + p['pos_emb'][:S][:, None, :]
    # bf16 kernel input halves the resident DMA block; the residual carry
    # inside the kernel stays f32.
    h0 = jnp.transpose(h, (1, 0, 2)).reshape(B * S, E).astype(bf16)

    # ---- one-time HBM-side weight prep --------------------------------------
    #  * all matmul weights transposed from PyTorch (N, K) to (K, N)
    #  * q/k/v and out-proj split per head on LEADING axes
    qkv_w = p['qkv_w'].reshape(L, 3, H, Dh, E)
    wq = jnp.transpose(qkv_w[:, 0], (0, 1, 3, 2)).astype(bf16)      # (L,H,E,Dh)
    wk = jnp.transpose(qkv_w[:, 1], (0, 1, 3, 2)).astype(bf16)
    wv = jnp.transpose(qkv_w[:, 2], (0, 1, 3, 2)).astype(bf16)
    qkv_b = p['qkv_b'].reshape(L, 3, H, 1, Dh).astype(f32)
    bq, bk, bv = qkv_b[:, 0], qkv_b[:, 1], qkv_b[:, 2]              # (L,H,1,Dh)
    wo = jnp.transpose(p['out_w'], (0, 2, 1)).reshape(L, H, Dh, E).astype(bf16)
    out_b = p['out_b'].astype(f32)                                  # (L,1,E)
    fc1_w = jnp.transpose(p['fc1_w'], (0, 2, 1)).astype(bf16)       # (L,E,4E)
    fc2_w = jnp.transpose(p['fc2_w'], (0, 2, 1)).astype(bf16)       # (L,4E,E)

    per_layer = [
        p['ln1_w'].astype(f32), p['ln1_b'].astype(f32),
        p['ln2_w'].astype(f32), p['ln2_b'].astype(f32),
        wq, bq, wk, bk, wv, bv, wo, out_b,
        fc1_w, p['fc1_b'].astype(f32), fc2_w, p['fc2_b'].astype(f32),
    ]

    def layer_spec(arr):
        nd = arr.ndim
        return pl.BlockSpec((1,) + arr.shape[1:],
                            lambda b, l, nd=nd: (l,) + (0,) * (nd - 1))

    in_specs = [pl.BlockSpec((Bt * S, E), lambda b, l: (b, 0))]
    in_specs += [layer_spec(a) for a in per_layer]

    layers_kernel = functools.partial(
        gpt_layers_kernel, num_heads=H, embed_dim=E, seq_len=S, batch_tile=Bt)

    # Kernel 1: all transformer layers; output block doubles as residual carry.
    h_final = pl.pallas_call(
        layers_kernel,
        grid_spec=pltpu.PrefetchScalarGridSpec(
            num_scalar_prefetch=0,
            grid=(B // Bt, num_layers),
            in_specs=in_specs,
            out_specs=pl.BlockSpec((Bt * S, E), lambda b, l: (b, 0)),
        ),
        out_shape=jax.ShapeDtypeStruct((B * S, E), f32),
        compiler_params=pltpu.CompilerParams(
            dimension_semantics=("parallel", "arbitrary"),
            vmem_limit_bytes=48 * 1024 * 1024),
    )(h0, *per_layer)

    # ---- kernel 2: final LN + LM head + classifier (separate pallas_call so
    # the head weights / logits never occupy VMEM during the layer loop) ------
    def pad_rows(w, n):
        return jnp.pad(w, ((0, n - w.shape[0]), (0, 0)))

    head_w = jnp.transpose(pad_rows(p['head_w'], Vp)).astype(bf16)   # (E, Vp)
    clf_w = jnp.transpose(pad_rows(p['clf_w'], Cp)).astype(bf16)     # (E, Cp)
    clf_b = jnp.pad(p['clf_b'], ((0, 0), (0, Cp - C))).astype(f32)   # (1, Cp)
    lnf_w = p['lnf_w'].astype(f32)
    lnf_b = p['lnf_b'].astype(f32)

    hk = functools.partial(head_kernel, seq_len=S, batch_tile=Bt)
    logits_flat, clf_pad = pl.pallas_call(
        hk,
        grid_spec=pltpu.PrefetchScalarGridSpec(
            num_scalar_prefetch=0,
            grid=(B // Bt,),
            in_specs=[
                pl.BlockSpec((Bt * S, E), lambda b: (b, 0)),
                pl.BlockSpec((1, E), lambda b: (0, 0)),
                pl.BlockSpec((1, E), lambda b: (0, 0)),
                pl.BlockSpec((E, Vp), lambda b: (0, 0)),
                pl.BlockSpec((E, Cp), lambda b: (0, 0)),
                pl.BlockSpec((1, Cp), lambda b: (0, 0)),
            ],
            out_specs=(
                pl.BlockSpec((Bt * S, Vp), lambda b: (b, 0)),
                pl.BlockSpec((1, Bt, Cp), lambda b: (b, 0, 0)),
            ),
        ),
        out_shape=(jax.ShapeDtypeStruct((B * S, Vp), f32),
                   jax.ShapeDtypeStruct((B // Bt, Bt, Cp), f32)),
        compiler_params=pltpu.CompilerParams(
            dimension_semantics=("parallel",),
            vmem_limit_bytes=48 * 1024 * 1024),
    )(h_final, lnf_w, lnf_b, head_w, clf_w, clf_b)

    logits = jnp.transpose(logits_flat.reshape(B, S, Vp)[:, :, :V], (1, 0, 2))
    clf = clf_pad.reshape(B, Cp)[:, :C]
    if classify:
        return clf, logits
    return logits


# --------------------------- deterministic params --------------------------- #

def init_params(key, *, num_vocab, num_positions, num_classes, embed_dim,
                num_layers):
    E, L, V, C, P = embed_dim, num_layers, num_vocab, num_classes, num_positions
    ks = jax.random.split(key, 14)

    def nrm(k, shape, std=0.02):
        return jax.random.normal(k, shape, dtype=jnp.float32) * std

    return dict(
        sos=nrm(ks[0], (E,)),
        tok_emb=nrm(ks[1], (V, E)),
        pos_emb=nrm(ks[2], (P, E)),
        ln1_w=jnp.ones((L, 1, E), jnp.float32),
        ln1_b=jnp.zeros((L, 1, E), jnp.float32),
        ln2_w=jnp.ones((L, 1, E), jnp.float32),
        ln2_b=jnp.zeros((L, 1, E), jnp.float32),
        qkv_w=nrm(ks[3], (L, 3 * E, E)),
        qkv_b=nrm(ks[4], (L, 1, 3 * E)),
        out_w=nrm(ks[5], (L, E, E)),
        out_b=nrm(ks[6], (L, 1, E)),
        fc1_w=nrm(ks[7], (L, 4 * E, E)),
        fc1_b=nrm(ks[8], (L, 1, 4 * E)),
        fc2_w=nrm(ks[9], (L, E, 4 * E)),
        fc2_b=nrm(ks[10], (L, 1, E)),
        lnf_w=jnp.ones((1, E), jnp.float32),
        lnf_b=jnp.zeros((1, E), jnp.float32),
        head_w=nrm(ks[11], (V, E)),
        clf_w=nrm(ks[12], (C, E)),
        clf_b=nrm(ks[13], (1, C)),
    )


# ---------------------------- pure-JAX reference ---------------------------- #

def reference_forward(x_tokens, p, *, num_layers, num_heads):
    S, B = x_tokens.shape
    E = p['tok_emb'].shape[1]
    H = num_heads
    Dh = E // H

    tok = jnp.take(p['tok_emb'], x_tokens, axis=0)
    sos = jnp.broadcast_to(p['sos'][None, None, :], (1, B, E))
    h = jnp.concatenate([sos, tok[:-1]], axis=0) + p['pos_emb'][:S][:, None, :]
    h = jnp.transpose(h, (1, 0, 2))                                  # (B, S, E)

    row = jax.lax.broadcasted_iota(jnp.int32, (S, S), 0)
    col = jax.lax.broadcasted_iota(jnp.int32, (S, S), 1)
    mask = jnp.where(col <= row, 0.0, -jnp.inf).astype(jnp.float32)

    for l in range(num_layers):
        xn = _layer_norm(h, p['ln1_w'][l], p['ln1_b'][l])
        qkv = jnp.einsum('bse,fe->bsf', xn, p['qkv_w'][l]) + p['qkv_b'][l]
        q, k, v = jnp.split(qkv, 3, axis=-1)
        q = q.reshape(B, S, H, Dh) / math.sqrt(Dh)
        k = k.reshape(B, S, H, Dh)
        v = v.reshape(B, S, H, Dh)
        s = jnp.einsum('bqhd,bkhd->bhqk', q, k) + mask
        pr = jax.nn.softmax(s, axis=-1)
        a = jnp.einsum('bhqk,bkhd->bqhd', pr, v).reshape(B, S, E)
        a = jnp.einsum('bse,fe->bsf', a, p['out_w'][l]) + p['out_b'][l]
        x = xn + a                   # residual onto ln_1(x), matching the spec
        xn2 = _layer_norm(x, p['ln2_w'][l], p['ln2_b'][l])
        m1 = _gelu(jnp.einsum('bse,fe->bsf', xn2, p['fc1_w'][l]) + p['fc1_b'][l])
        m2 = jnp.einsum('bsf,ef->bse', m1, p['fc2_w'][l]) + p['fc2_b'][l]
        h = x + m2

    hf = _layer_norm(h, p['lnf_w'], p['lnf_b'])
    logits = jnp.einsum('bse,ve->bsv', hf, p['head_w'])
    pooled = jnp.mean(hf, axis=1)
    clf = pooled @ p['clf_w'].T + p['clf_b'][0]
    return clf, jnp.transpose(logits, (1, 0, 2))


# ----------------------------------- main ----------------------------------- #

if __name__ == "__main__":
    num_pixels = 4                    # -> sequence length = num_pixels**2 = 16
    num_vocab = 16
    num_classes = 10
    embed_dim = 64
    num_heads = 2
    num_layers = 2                    # small for a quick synthetic run
    S = num_pixels * num_pixels
    B = 2

    key = jax.random.PRNGKey(0)
    kp, kx = jax.random.split(key)
    params = init_params(kp, num_vocab=num_vocab, num_positions=S,
                         num_classes=num_classes, embed_dim=embed_dim,
                         num_layers=num_layers)
    x = jax.random.randint(kx, (S, B), 0, num_vocab, dtype=jnp.int32)

    clf, logits = image_gpt_forward(x, params, num_layers=num_layers,
                                    num_heads=num_heads, classify=True)
    jax.block_until_ready((clf, logits))

    clf_ref, logits_ref = reference_forward(x, params, num_layers=num_layers,
                                            num_heads=num_heads)
    # Kernel uses bf16 matmul operands / bf16 input + approx reciprocal; compare
    # vs the f32 reference with a correspondingly looser tolerance.
    np.testing.assert_allclose(np.asarray(logits), np.asarray(logits_ref),
                               atol=2e-2, rtol=2e-2)
    np.testing.assert_allclose(np.asarray(clf), np.asarray(clf_ref),
                               atol=2e-2, rtol=2e-2)
    assert logits.shape == (S, B, num_vocab)
    assert clf.shape == (B, num_classes)
    print("KERNEL_OK")
</pallas_src>

<mosaic_0001>
module attributes {stable_mosaic.version = 11 : i64} {
  func.func @gpt_layers_kernel(%arg0: i32, %arg1: i32, %arg2: memref<32x64xbf16, #tpu.memory_space<vmem>>, %arg3: memref<1x1x64xf32, #tpu.memory_space<vmem>>, %arg4: memref<1x1x64xf32, #tpu.memory_space<vmem>>, %arg5: memref<1x1x64xf32, #tpu.memory_space<vmem>>, %arg6: memref<1x1x64xf32, #tpu.memory_space<vmem>>, %arg7: memref<1x2x64x32xbf16, #tpu.memory_space<vmem>>, %arg8: memref<1x2x1x32xf32, #tpu.memory_space<vmem>>, %arg9: memref<1x2x64x32xbf16, #tpu.memory_space<vmem>>, %arg10: memref<1x2x1x32xf32, #tpu.memory_space<vmem>>, %arg11: memref<1x2x64x32xbf16, #tpu.memory_space<vmem>>, %arg12: memref<1x2x1x32xf32, #tpu.memory_space<vmem>>, %arg13: memref<1x2x32x64xbf16, #tpu.memory_space<vmem>>, %arg14: memref<1x1x64xf32, #tpu.memory_space<vmem>>, %arg15: memref<1x64x256xbf16, #tpu.memory_space<vmem>>, %arg16: memref<1x1x256xf32, #tpu.memory_space<vmem>>, %arg17: memref<1x256x64xbf16, #tpu.memory_space<vmem>>, %arg18: memref<1x1x64xf32, #tpu.memory_space<vmem>>, %arg19: memref<32x64xf32, #tpu.memory_space<vmem>>) attributes {dimension_semantics = [#tpu.dimension_semantics<parallel>, #tpu.dimension_semantics<arbitrary>], iteration_bounds = array<i64: 1, 2>, scalar_prefetch = 0 : i64, scratch_operands = 0 : i64, tpu.core_type = #tpu.core_type<tc>, window_params = [{transform_indices = @transform_0, window_bounds = array<i64: 32, 64>}, {transform_indices = @transform_1, window_bounds = array<i64: 1, 1, 64>}, {transform_indices = @transform_2, window_bounds = array<i64: 1, 1, 64>}, {transform_indices = @transform_3, window_bounds = array<i64: 1, 1, 64>}, {transform_indices = @transform_4, window_bounds = array<i64: 1, 1, 64>}, {transform_indices = @transform_5, window_bounds = array<i64: 1, 2, 64, 32>}, {transform_indices = @transform_6, window_bounds = array<i64: 1, 2, 1, 32>}, {transform_indices = @transform_7, window_bounds = array<i64: 1, 2, 64, 32>}, {transform_indices = @transform_8, window_bounds = array<i64: 1, 2, 1, 32>}, {transform_indices = @transform_9, window_bounds = array<i64: 1, 2, 64, 32>}, {transform_indices = @transform_10, window_bounds = array<i64: 1, 2, 1, 32>}, {transform_indices = @transform_11, window_bounds = array<i64: 1, 2, 32, 64>}, {transform_indices = @transform_12, window_bounds = array<i64: 1, 1, 64>}, {transform_indices = @transform_13, window_bounds = array<i64: 1, 64, 256>}, {transform_indices = @transform_14, window_bounds = array<i64: 1, 1, 256>}, {transform_indices = @transform_15, window_bounds = array<i64: 1, 256, 64>}, {transform_indices = @transform_16, window_bounds = array<i64: 1, 1, 64>}, {transform_indices = @transform_17, window_bounds = array<i64: 32, 64>}]} {
    %c0_i32 = arith.constant 0 : i32
    %0 = arith.cmpi eq, %arg1, %c0_i32 : i32
    %1 = arith.extui %0 : i1 to i32
    %c0_i32_0 = arith.constant 0 : i32
    %2 = arith.cmpi ne, %1, %c0_i32_0 : i32
    scf.if %2 {
      %c0_121 = arith.constant 0 : index
      %c0_122 = arith.constant 0 : index
      %197 = vector.load %arg2[%c0_121, %c0_122] : memref<32x64xbf16, #tpu.memory_space<vmem>>, vector<32x64xbf16>
      %198 = arith.extf %197 : vector<32x64xbf16> to vector<32x64xf32>
      %c0_123 = arith.constant 0 : index
      %c0_124 = arith.constant 0 : index
      %199 = vector.load %arg19[%c0_123, %c0_124] : memref<32x64xf32, #tpu.memory_space<vmem>>, vector<32x64xf32>
      tpu.vector_store %arg19[%c0_123, %c0_124], %198 {strides = array<i32>} : memref<32x64xf32, #tpu.memory_space<vmem>>, vector<32x64xf32>,
    } else {
    }
    %c0 = arith.constant 0 : index
    %c0_1 = arith.constant 0 : index
    %3 = vector.load %arg19[%c0, %c0_1] : memref<32x64xf32, #tpu.memory_space<vmem>>, vector<32x64xf32>
    %4 = tpu.iota {dimensions = array<i32: 0>} : vector<16x16xi32>
    %5 = tpu.iota {dimensions = array<i32: 1>} : vector<16x16xi32>
    %6 = arith.cmpi sle, %5, %4 : vector<16x16xi32>
    %7 = vector.shape_cast %6 : vector<16x16xi1> to vector<1x16x16xi1>
    %c0_2 = arith.constant 0 : index
    %c0_3 = arith.constant 0 : index
    %c0_4 = arith.constant 0 : index
    %8 = vector.load %arg3[%c0_2, %c0_3, %c0_4] : memref<1x1x64xf32, #tpu.memory_space<vmem>>, vector<1x1x64xf32>
    %9 = vector.shape_cast %8 : vector<1x1x64xf32> to vector<1x64xf32>
    %c0_5 = arith.constant 0 : index
    %c0_6 = arith.constant 0 : index
    %c0_7 = arith.constant 0 : index
    %10 = vector.load %arg4[%c0_5, %c0_6, %c0_7] : memref<1x1x64xf32, #tpu.memory_space<vmem>>, vector<1x1x64xf32>
    %11 = vector.shape_cast %10 : vector<1x1x64xf32> to vector<1x64xf32>
    %cst = arith.constant dense<0.000000e+00> : vector<32xf32>
    %12 = vector.multi_reduction <add>, %3, %cst [1] : vector<32x64xf32> to vector<32xf32>
    %13 = vector.shape_cast %12 : vector<32xf32> to vector<32x1xf32>
    %cst_8 = arith.constant 6.400000e+01 : f32
    %14 = vector.broadcast %cst_8 : f32 to vector<32x1xf32>
    %15 = arith.divf %13, %14 : vector<32x1xf32>
    %16 = vector.broadcast %15 : vector<32x1xf32> to vector<32x64xf32>
    %17 = arith.subf %3, %16 : vector<32x64xf32>
    %18 = arith.mulf %17, %17 : vector<32x64xf32>
    %cst_9 = arith.constant dense<0.000000e+00> : vector<32xf32>
    %19 = vector.multi_reduction <add>, %18, %cst_9 [1] : vector<32x64xf32> to vector<32xf32>
    %20 = vector.shape_cast %19 : vector<32xf32> to vector<32x1xf32>
    %cst_10 = arith.constant 6.400000e+01 : f32
    %21 = vector.broadcast %cst_10 : f32 to vector<32x1xf32>
    %22 = arith.divf %20, %21 : vector<32x1xf32>
    %23 = vector.broadcast %15 : vector<32x1xf32> to vector<32x64xf32>
    %24 = arith.subf %3, %23 : vector<32x64xf32>
    %cst_11 = arith.constant 9.99999974E-6 : f32
    %25 = vector.broadcast %cst_11 : f32 to vector<32x1xf32>
    %26 = arith.addf %22, %25 : vector<32x1xf32>
    %27 = math.rsqrt %26 : vector<32x1xf32>
    %28 = vector.broadcast %27 : vector<32x1xf32> to vector<32x64xf32>
    %29 = arith.mulf %24, %28 : vector<32x64xf32>
    %30 = vector.broadcast %9 : vector<1x64xf32> to vector<32x64xf32>
    %31 = arith.mulf %29, %30 : vector<32x64xf32>
    %32 = vector.broadcast %11 : vector<1x64xf32> to vector<32x64xf32>
    %33 = arith.addf %31, %32 : vector<32x64xf32>
    %34 = arith.truncf %33 : vector<32x64xf32> to vector<32x64xbf16>
    %cst_12 = arith.constant 0.000000e+00 : f32
    %35 = vector.broadcast %cst_12 : f32 to vector<32x64xf32>
    %c0_13 = arith.constant 0 : index
    %c0_14 = arith.constant 0 : index
    %c0_15 = arith.constant 0 : index
    %c0_16 = arith.constant 0 : index
    %36 = vector.load %arg7[%c0_13, %c0_14, %c0_15, %c0_16] : memref<1x2x64x32xbf16, #tpu.memory_space<vmem>>, vector<1x1x64x32xbf16>
    %37 = vector.shape_cast %36 : vector<1x1x64x32xbf16> to vector<64x32xbf16>
    %cst_17 = arith.constant dense<0.000000e+00> : vector<32x32xf32>
    %38 = tpu.matmul %34, %37, %cst_17 {dimension_numbers = #tpu.dot_dimension_numbers<[1], [0], [0], [1], [0, 0, 1, 1], [], []>} : vector<32x64xbf16>, vector<64x32xbf16>, vector<32x32xf32> -> vector<32x32xf32>
    %c0_18 = arith.constant 0 : index
    %c0_19 = arith.constant 0 : index
    %c0_20 = arith.constant 0 : index
    %c0_21 = arith.constant 0 : index
    %39 = vector.load %arg8[%c0_18, %c0_19, %c0_20, %c0_21] : memref<1x2x1x32xf32, #tpu.memory_space<vmem>>, vector<1x1x1x32xf32>
    %40 = vector.shape_cast %39 : vector<1x1x1x32xf32> to vector<1x32xf32>
    %41 = vector.broadcast %40 : vector<1x32xf32> to vector<32x32xf32>
    %42 = arith.addf %38, %41 : vector<32x32xf32>
    %43 = arith.truncf %42 : vector<32x32xf32> to vector<32x32xbf16>
    %44 = vector.shape_cast %43 : vector<32x32xbf16> to vector<2x16x32xbf16>
    %c0_22 = arith.constant 0 : index
    %c0_23 = arith.constant 0 : index
    %c0_24 = arith.constant 0 : index
    %c0_25 = arith.constant 0 : index
    %45 = vector.load %arg9[%c0_22, %c0_23, %c0_24, %c0_25] : memref<1x2x64x32xbf16, #tpu.memory_space<vmem>>, vector<1x1x64x32xbf16>
    %46 = vector.shape_cast %45 : vector<1x1x64x32xbf16> to vector<64x32xbf16>
    %cst_26 = arith.constant dense<0.000000e+00> : vector<32x32xf32>
    %47 = tpu.matmul %34, %46, %cst_26 {dimension_numbers = #tpu.dot_dimension_numbers<[1], [0], [0], [1], [0, 0, 1, 1], [], []>} : vector<32x64xbf16>, vector<64x32xbf16>, vector<32x32xf32> -> vector<32x32xf32>
    %c0_27 = arith.constant 0 : index
    %c0_28 = arith.constant 0 : index
    %c0_29 = arith.constant 0 : index
    %c0_30 = arith.constant 0 : index
    %48 = vector.load %arg10[%c0_27, %c0_28, %c0_29, %c0_30] : memref<1x2x1x32xf32, #tpu.memory_space<vmem>>, vector<1x1x1x32xf32>
    %49 = vector.shape_cast %48 : vector<1x1x1x32xf32> to vector<1x32xf32>
    %50 = vector.broadcast %49 : vector<1x32xf32> to vector<32x32xf32>
    %51 = arith.addf %47, %50 : vector<32x32xf32>
    %52 = arith.truncf %51 : vector<32x32xf32> to vector<32x32xbf16>
    %53 = vector.shape_cast %52 : vector<32x32xbf16> to vector<2x16x32xbf16>
    %c0_31 = arith.constant 0 : index
    %c0_32 = arith.constant 0 : index
    %c0_33 = arith.constant 0 : index
    %c0_34 = arith.constant 0 : index
    %54 = vector.load %arg11[%c0_31, %c0_32, %c0_33, %c0_34] : memref<1x2x64x32xbf16, #tpu.memory_space<vmem>>, vector<1x1x64x32xbf16>
    %55 = vector.shape_cast %54 : vector<1x1x64x32xbf16> to vector<64x32xbf16>
    %cst_35 = arith.constant dense<0.000000e+00> : vector<32x32xf32>
    %56 = tpu.matmul %34, %55, %cst_35 {dimension_numbers = #tpu.dot_dimension_numbers<[1], [0], [0], [1], [0, 0, 1, 1], [], []>} : vector<32x64xbf16>, vector<64x32xbf16>, vector<32x32xf32> -> vector<32x32xf32>
    %c0_36 = arith.constant 0 : index
    %c0_37 = arith.constant 0 : index
    %c0_38 = arith.constant 0 : index
    %c0_39 = arith.constant 0 : index
    %57 = vector.load %arg12[%c0_36, %c0_37, %c0_38, %c0_39] : memref<1x2x1x32xf32, #tpu.memory_space<vmem>>, vector<1x1x1x32xf32>
    %58 = vector.shape_cast %57 : vector<1x1x1x32xf32> to vector<1x32xf32>
    %59 = vector.broadcast %58 : vector<1x32xf32> to vector<32x32xf32>
    %60 = arith.addf %56, %59 : vector<32x32xf32>
    %61 = arith.truncf %60 : vector<32x32xf32> to vector<32x32xbf16>
    %62 = vector.shape_cast %61 : vector<32x32xbf16> to vector<2x16x32xbf16>
    "tpu.trace_start"() <{level = 10 : i32, message = "bqd,bkd->bqk"}> : () -> ()
    %cst_40 = arith.constant dense<0.000000e+00> : vector<2x16x16xf32>
    %63 = tpu.matmul %44, %53, %cst_40 {dimension_numbers = #tpu.dot_dimension_numbers<[2], [2], [1], [1], [0, 0, 0, 1, 1, 1], [0], [0]>} : vector<2x16x32xbf16>, vector<2x16x32xbf16>, vector<2x16x16xf32> -> vector<2x16x16xf32>
    "tpu.trace_stop"() : () -> ()
    %cst_41 = arith.constant 0.176776692 : f32
    %64 = vector.broadcast %cst_41 : f32 to vector<2x16x16xf32>
    %65 = arith.mulf %63, %64 : vector<2x16x16xf32>
    %cst_42 = arith.constant -1.000000e+30 : f32
    %66 = vector.shape_cast %7 : vector<1x16x16xi1> to vector<1x16x16xi1>
    %67 = vector.broadcast %66 : vector<1x16x16xi1> to vector<2x16x16xi1>
    %68 = vector.broadcast %cst_42 : f32 to vector<2x16x16xf32>
    %69 = arith.select %67, %65, %68 : vector<2x16x16xi1>, vector<2x16x16xf32>
    %cst_43 = arith.constant dense<0xFF800000> : vector<2x16xf32>
    %70 = vector.multi_reduction <maximumf>, %69, %cst_43 [2] : vector<2x16x16xf32> to vector<2x16xf32>
    %71 = vector.shape_cast %70 : vector<2x16xf32> to vector<2x16x1xf32>
    %72 = vector.broadcast %71 : vector<2x16x1xf32> to vector<2x16x16xf32>
    %73 = arith.subf %69, %72 : vector<2x16x16xf32>
    %74 = math.exp %73 : vector<2x16x16xf32>
    %cst_44 = arith.constant dense<0.000000e+00> : vector<2x16xf32>
    %75 = vector.multi_reduction <add>, %74, %cst_44 [2] : vector<2x16x16xf32> to vector<2x16xf32>
    %76 = vector.shape_cast %75 : vector<2x16xf32> to vector<2x16x1xf32>
    %77 = tpu.reciprocal %76 {approx = true} : vector<2x16x1xf32> -> vector<2x16x1xf32>
    %78 = vector.broadcast %77 : vector<2x16x1xf32> to vector<2x16x16xf32>
    %79 = arith.mulf %74, %78 : vector<2x16x16xf32>
    %80 = arith.truncf %79 : vector<2x16x16xf32> to vector<2x16x16xbf16>
    "tpu.trace_start"() <{level = 10 : i32, message = "bqk,bkd->bqd"}> : () -> ()
    %cst_45 = arith.constant dense<0.000000e+00> : vector<2x16x32xf32>
    %81 = tpu.matmul %80, %62, %cst_45 {dimension_numbers = #tpu.dot_dimension_numbers<[2], [1], [1], [2], [0, 0, 0, 1, 1, 2], [0], [0]>} : vector<2x16x16xbf16>, vector<2x16x32xbf16>, vector<2x16x32xf32> -> vector<2x16x32xf32>
    "tpu.trace_stop"() : () -> ()
    %82 = vector.shape_cast %81 : vector<2x16x32xf32> to vector<32x32xf32>
    %83 = arith.truncf %82 : vector<32x32xf32> to vector<32x32xbf16>
    %c0_46 = arith.constant 0 : index
    %c0_47 = arith.constant 0 : index
    %c0_48 = arith.constant 0 : index
    %c0_49 = arith.constant 0 : index
    %84 = vector.load %arg13[%c0_46, %c0_47, %c0_48, %c0_49] : memref<1x2x32x64xbf16, #tpu.memory_space<vmem>>, vector<1x1x32x64xbf16>
    %85 = vector.shape_cast %84 : vector<1x1x32x64xbf16> to vector<32x64xbf16>
    %cst_50 = arith.constant dense<0.000000e+00> : vector<32x64xf32>
    %86 = tpu.matmul %83, %85, %cst_50 {dimension_numbers = #tpu.dot_dimension_numbers<[1], [0], [0], [1], [0, 0, 1, 1], [], []>} : vector<32x32xbf16>, vector<32x64xbf16>, vector<32x64xf32> -> vector<32x64xf32>
    %87 = arith.addf %35, %86 : vector<32x64xf32>
    %c0_51 = arith.constant 0 : index
    %c1 = arith.constant 1 : index
    %c0_52 = arith.constant 0 : index
    %c0_53 = arith.constant 0 : index
    %88 = vector.load %arg7[%c0_51, %c1, %c0_52, %c0_53] : memref<1x2x64x32xbf16, #tpu.memory_space<vmem>>, vector<1x1x64x32xbf16>
    %89 = vector.shape_cast %88 : vector<1x1x64x32xbf16> to vector<64x32xbf16>
    %cst_54 = arith.constant dense<0.000000e+00> : vector<32x32xf32>
    %90 = tpu.matmul %34, %89, %cst_54 {dimension_numbers = #tpu.dot_dimension_numbers<[1], [0], [0], [1], [0, 0, 1, 1], [], []>} : vector<32x64xbf16>, vector<64x32xbf16>, vector<32x32xf32> -> vector<32x32xf32>
    %c0_55 = arith.constant 0 : index
    %c1_56 = arith.constant 1 : index
    %c0_57 = arith.constant 0 : index
    %c0_58 = arith.constant 0 : index
    %91 = vector.load %arg8[%c0_55, %c1_56, %c0_57, %c0_58] : memref<1x2x1x32xf32, #tpu.memory_space<vmem>>, vector<1x1x1x32xf32>
    %92 = vector.shape_cast %91 : vector<1x1x1x32xf32> to vector<1x32xf32>
    %93 = vector.broadcast %92 : vector<1x32xf32> to vector<32x32xf32>
    %94 = arith.addf %90, %93 : vector<32x32xf32>
    %95 = arith.truncf %94 : vector<32x32xf32> to vector<32x32xbf16>
    %96 = vector.shape_cast %95 : vector<32x32xbf16> to vector<2x16x32xbf16>
    %c0_59 = arith.constant 0 : index
    %c1_60 = arith.constant 1 : index
    %c0_61 = arith.constant 0 : index
    %c0_62 = arith.constant 0 : index
    %97 = vector.load %arg9[%c0_59, %c1_60, %c0_61, %c0_62] : memref<1x2x64x32xbf16, #tpu.memory_space<vmem>>, vector<1x1x64x32xbf16>
    %98 = vector.shape_cast %97 : vector<1x1x64x32xbf16> to vector<64x32xbf16>
    %cst_63 = arith.constant dense<0.000000e+00> : vector<32x32xf32>
    %99 = tpu.matmul %34, %98, %cst_63 {dimension_numbers = #tpu.dot_dimension_numbers<[1], [0], [0], [1], [0, 0, 1, 1], [], []>} : vector<32x64xbf16>, vector<64x32xbf16>, vector<32x32xf32> -> vector<32x32xf32>
    %c0_64 = arith.constant 0 : index
    %c1_65 = arith.constant 1 : index
    %c0_66 = arith.constant 0 : index
    %c0_67 = arith.constant 0 : index
    %100 = vector.load %arg10[%c0_64, %c1_65, %c0_66, %c0_67] : memref<1x2x1x32xf32, #tpu.memory_space<vmem>>, vector<1x1x1x32xf32>
    %101 = vector.shape_cast %100 : vector<1x1x1x32xf32> to vector<1x32xf32>
    %102 = vector.broadcast %101 : vector<1x32xf32> to vector<32x32xf32>
    %103 = arith.addf %99, %102 : vector<32x32xf32>
    %104 = arith.truncf %103 : vector<32x32xf32> to vector<32x32xbf16>
    %105 = vector.shape_cast %104 : vector<32x32xbf16> to vector<2x16x32xbf16>
    %c0_68 = arith.constant 0 : index
    %c1_69 = arith.constant 1 : index
    %c0_70 = arith.constant 0 : index
    %c0_71 = arith.constant 0 : index
    %106 = vector.load %arg11[%c0_68, %c1_69, %c0_70, %c0_71] : memref<1x2x64x32xbf16, #tpu.memory_space<vmem>>, vector<1x1x64x32xbf16>
    %107 = vector.shape_cast %106 : vector<1x1x64x32xbf16> to vector<64x32xbf16>
    %cst_72 = arith.constant dense<0.000000e+00> : vector<32x32xf32>
    %108 = tpu.matmul %34, %107, %cst_72 {dimension_numbers = #tpu.dot_dimension_numbers<[1], [0], [0], [1], [0, 0, 1, 1], [], []>} : vector<32x64xbf16>, vector<64x32xbf16>, vector<32x32xf32> -> vector<32x32xf32>
    %c0_73 = arith.constant 0 : index
    %c1_74 = arith.constant 1 : index
    %c0_75 = arith.constant 0 : index
    %c0_76 = arith.constant 0 : index
    %109 = vector.load %arg12[%c0_73, %c1_74, %c0_75, %c0_76] : memref<1x2x1x32xf32, #tpu.memory_space<vmem>>, vector<1x1x1x32xf32>
    %110 = vector.shape_cast %109 : vector<1x1x1x32xf32> to vector<1x32xf32>
    %111 = vector.broadcast %110 : vector<1x32xf32> to vector<32x32xf32>
    %112 = arith.addf %108, %111 : vector<32x32xf32>
    %113 = arith.truncf %112 : vector<32x32xf32> to vector<32x32xbf16>
    %114 = vector.shape_cast %113 : vector<32x32xbf16> to vector<2x16x32xbf16>
    "tpu.trace_start"() <{level = 10 : i32, message = "bqd,bkd->bqk"}> : () -> ()
    %cst_77 = arith.constant dense<0.000000e+00> : vector<2x16x16xf32>
    %115 = tpu.matmul %96, %105, %cst_77 {dimension_numbers = #tpu.dot_dimension_numbers<[2], [2], [1], [1], [0, 0, 0, 1, 1, 1], [0], [0]>} : vector<2x16x32xbf16>, vector<2x16x32xbf16>, vector<2x16x16xf32> -> vector<2x16x16xf32>
    "tpu.trace_stop"() : () -> ()
    %cst_78 = arith.constant 0.176776692 : f32
    %116 = vector.broadcast %cst_78 : f32 to vector<2x16x16xf32>
    %117 = arith.mulf %115, %116 : vector<2x16x16xf32>
    %cst_79 = arith.constant -1.000000e+30 : f32
    %118 = vector.shape_cast %7 : vector<1x16x16xi1> to vector<1x16x16xi1>
    %119 = vector.broadcast %118 : vector<1x16x16xi1> to vector<2x16x16xi1>
    %120 = vector.broadcast %cst_79 : f32 to vector<2x16x16xf32>
    %121 = arith.select %119, %117, %120 : vector<2x16x16xi1>, vector<2x16x16xf32>
    %cst_80 = arith.constant dense<0xFF800000> : vector<2x16xf32>
    %122 = vector.multi_reduction <maximumf>, %121, %cst_80 [2] : vector<2x16x16xf32> to vector<2x16xf32>
    %123 = vector.shape_cast %122 : vector<2x16xf32> to vector<2x16x1xf32>
    %124 = vector.broadcast %123 : vector<2x16x1xf32> to vector<2x16x16xf32>
    %125 = arith.subf %121, %124 : vector<2x16x16xf32>
    %126 = math.exp %125 : vector<2x16x16xf32>
    %cst_81 = arith.constant dense<0.000000e+00> : vector<2x16xf32>
    %127 = vector.multi_reduction <add>, %126, %cst_81 [2] : vector<2x16x16xf32> to vector<2x16xf32>
    %128 = vector.shape_cast %127 : vector<2x16xf32> to vector<2x16x1xf32>
    %129 = tpu.reciprocal %128 {approx = true} : vector<2x16x1xf32> -> vector<2x16x1xf32>
    %130 = vector.broadcast %129 : vector<2x16x1xf32> to vector<2x16x16xf32>
    %131 = arith.mulf %126, %130 : vector<2x16x16xf32>
    %132 = arith.truncf %131 : vector<2x16x16xf32> to vector<2x16x16xbf16>
    "tpu.trace_start"() <{level = 10 : i32, message = "bqk,bkd->bqd"}> : () -> ()
    %cst_82 = arith.constant dense<0.000000e+00> : vector<2x16x32xf32>
    %133 = tpu.matmul %132, %114, %cst_82 {dimension_numbers = #tpu.dot_dimension_numbers<[2], [1], [1], [2], [0, 0, 0, 1, 1, 2], [0], [0]>} : vector<2x16x16xbf16>, vector<2x16x32xbf16>, vector<2x16x32xf32> -> vector<2x16x32xf32>
    "tpu.trace_stop"() : () -> ()
    %134 = vector.shape_cast %133 : vector<2x16x32xf32> to vector<32x32xf32>
    %135 = arith.truncf %134 : vector<32x32xf32> to vector<32x32xbf16>
    %c0_83 = arith.constant 0 : index
    %c1_84 = arith.constant 1 : index
    %c0_85 = arith.constant 0 : index
    %c0_86 = arith.constant 0 : index
    %136 = vector.load %arg13[%c0_83, %c1_84, %c0_85, %c0_86] : memref<1x2x32x64xbf16, #tpu.memory_space<vmem>>, vector<1x1x32x64xbf16>
    %137 = vector.shape_cast %136 : vector<1x1x32x64xbf16> to vector<32x64xbf16>
    %cst_87 = arith.constant dense<0.000000e+00> : vector<32x64xf32>
    %138 = tpu.matmul %135, %137, %cst_87 {dimension_numbers = #tpu.dot_dimension_numbers<[1], [0], [0], [1], [0, 0, 1, 1], [], []>} : vector<32x32xbf16>, vector<32x64xbf16>, vector<32x64xf32> -> vector<32x64xf32>
    %139 = arith.addf %87, %138 : vector<32x64xf32>
    %c0_88 = arith.constant 0 : index
    %c0_89 = arith.constant 0 : index
    %c0_90 = arith.constant 0 : index
    %140 = vector.load %arg14[%c0_88, %c0_89, %c0_90] : memref<1x1x64xf32, #tpu.memory_space<vmem>>, vector<1x1x64xf32>
    %141 = vector.shape_cast %140 : vector<1x1x64xf32> to vector<1x64xf32>
    %142 = vector.broadcast %141 : vector<1x64xf32> to vector<32x64xf32>
    %143 = arith.addf %139, %142 : vector<32x64xf32>
    %144 = arith.addf %33, %143 : vector<32x64xf32>
    %c0_91 = arith.constant 0 : index
    %c0_92 = arith.constant 0 : index
    %c0_93 = arith.constant 0 : index
    %145 = vector.load %arg5[%c0_91, %c0_92, %c0_93] : memref<1x1x64xf32, #tpu.memory_space<vmem>>, vector<1x1x64xf32>
    %146 = vector.shape_cast %145 : vector<1x1x64xf32> to vector<1x64xf32>
    %c0_94 = arith.constant 0 : index
    %c0_95 = arith.constant 0 : index
    %c0_96 = arith.constant 0 : index
    %147 = vector.load %arg6[%c0_94, %c0_95, %c0_96] : memref<1x1x64xf32, #tpu.memory_space<vmem>>, vector<1x1x64xf32>
    %148 = vector.shape_cast %147 : vector<1x1x64xf32> to vector<1x64xf32>
    %cst_97 = arith.constant dense<0.000000e+00> : vector<32xf32>
    %149 = vector.multi_reduction <add>, %144, %cst_97 [1] : vector<32x64xf32> to vector<32xf32>
    %150 = vector.shape_cast %149 : vector<32xf32> to vector<32x1xf32>
    %cst_98 = arith.constant 6.400000e+01 : f32
    %151 = vector.broadcast %cst_98 : f32 to vector<32x1xf32>
    %152 = arith.divf %150, %151 : vector<32x1xf32>
    %153 = vector.broadcast %152 : vector<32x1xf32> to vector<32x64xf32>
    %154 = arith.subf %144, %153 : vector<32x64xf32>
    %155 = arith.mulf %154, %154 : vector<32x64xf32>
    %cst_99 = arith.constant dense<0.000000e+00> : vector<32xf32>
    %156 = vector.multi_reduction <add>, %155, %cst_99 [1] : vector<32x64xf32> to vector<32xf32>
    %157 = vector.shape_cast %156 : vector<32xf32> to vector<32x1xf32>
    %cst_100 = arith.constant 6.400000e+01 : f32
    %158 = vector.broadcast %cst_100 : f32 to vector<32x1xf32>
    %159 = arith.divf %157, %158 : vector<32x1xf32>
    %160 = vector.broadcast %152 : vector<32x1xf32> to vector<32x64xf32>
    %161 = arith.subf %144, %160 : vector<32x64xf32>
    %cst_101 = arith.constant 9.99999974E-6 : f32
    %162 = vector.broadcast %cst_101 : f32 to vector<32x1xf32>
    %163 = arith.addf %159, %162 : vector<32x1xf32>
    %164 = math.rsqrt %163 : vector<32x1xf32>
    %165 = vector.broadcast %164 : vector<32x1xf32> to vector<32x64xf32>
    %166 = arith.mulf %161, %165 : vector<32x64xf32>
    %167 = vector.broadcast %146 : vector<1x64xf32> to vector<32x64xf32>
    %168 = arith.mulf %166, %167 : vector<32x64xf32>
    %169 = vector.broadcast %148 : vector<1x64xf32> to vector<32x64xf32>
    %170 = arith.addf %168, %169 : vector<32x64xf32>
    %171 = arith.truncf %170 : vector<32x64xf32> to vector<32x64xbf16>
    %c0_102 = arith.constant 0 : index
    %c0_103 = arith.constant 0 : index
    %c0_104 = arith.constant 0 : index
    %172 = vector.load %arg15[%c0_102, %c0_103, %c0_104] : memref<1x64x256xbf16, #tpu.memory_space<vmem>>, vector<1x64x256xbf16>
    %173 = vector.shape_cast %172 : vector<1x64x256xbf16> to vector<64x256xbf16>
    %cst_105 = arith.constant dense<0.000000e+00> : vector<32x256xf32>
    %174 = tpu.matmul %171, %173, %cst_105 {dimension_numbers = #tpu.dot_dimension_numbers<[1], [0], [0], [1], [0, 0, 1, 1], [], []>} : vector<32x64xbf16>, vector<64x256xbf16>, vector<32x256xf32> -> vector<32x256xf32>
    %c0_106 = arith.constant 0 : index
    %c0_107 = arith.constant 0 : index
    %c0_108 = arith.constant 0 : index
    %175 = vector.load %arg16[%c0_106, %c0_107, %c0_108] : memref<1x1x256xf32, #tpu.memory_space<vmem>>, vector<1x1x256xf32>
    %176 = vector.shape_cast %175 : vector<1x1x256xf32> to vector<1x256xf32>
    %177 = vector.broadcast %176 : vector<1x256xf32> to vector<32x256xf32>
    %178 = arith.addf %174, %177 : vector<32x256xf32>
    %cst_109 = arith.constant 5.000000e-01 : f32
    %179 = vector.broadcast %cst_109 : f32 to vector<32x256xf32>
    %180 = arith.mulf %179, %178 : vector<32x256xf32>
    %cst_110 = arith.constant 0.707106769 : f32
    %181 = vector.broadcast %cst_110 : f32 to vector<32x256xf32>
    %182 = arith.mulf %178, %181 : vector<32x256xf32>
    %183 = math.erf %182 : vector<32x256xf32>
    %cst_111 = arith.constant 1.000000e+00 : f32
    %184 = vector.broadcast %cst_111 : f32 to vector<32x256xf32>
    %185 = arith.addf %184, %183 : vector<32x256xf32>
    %186 = arith.mulf %180, %185 : vector<32x256xf32>
    %187 = arith.truncf %186 : vector<32x256xf32> to vector<32x256xbf16>
    %c0_112 = arith.constant 0 : index
    %c0_113 = arith.constant 0 : index
    %c0_114 = arith.constant 0 : index
    %188 = vector.load %arg17[%c0_112, %c0_113, %c0_114] : memref<1x256x64xbf16, #tpu.memory_space<vmem>>, vector<1x256x64xbf16>
    %189 = vector.shape_cast %188 : vector<1x256x64xbf16> to vector<256x64xbf16>
    %cst_115 = arith.constant dense<0.000000e+00> : vector<32x64xf32>
    %190 = tpu.matmul %187, %189, %cst_115 {dimension_numbers = #tpu.dot_dimension_numbers<[1], [0], [0], [1], [0, 0, 1, 1], [], []>} : vector<32x256xbf16>, vector<256x64xbf16>, vector<32x64xf32> -> vector<32x64xf32>
    %c0_116 = arith.constant 0 : index
    %c0_117 = arith.constant 0 : index
    %c0_118 = arith.constant 0 : index
    %191 = vector.load %arg18[%c0_116, %c0_117, %c0_118] : memref<1x1x64xf32, #tpu.memory_space<vmem>>, vector<1x1x64xf32>
    %192 = vector.shape_cast %191 : vector<1x1x64xf32> to vector<1x64xf32>
    %193 = vector.broadcast %192 : vector<1x64xf32> to vector<32x64xf32>
    %194 = arith.addf %190, %193 : vector<32x64xf32>
    %195 = arith.addf %144, %194 : vector<32x64xf32>
    %c0_119 = arith.constant 0 : index
    %c0_120 = arith.constant 0 : index
    %196 = vector.load %arg19[%c0_119, %c0_120] : memref<32x64xf32, #tpu.memory_space<vmem>>, vector<32x64xf32>
    tpu.vector_store %arg19[%c0_119, %c0_120], %195 {strides = array<i32>} : memref<32x64xf32, #tpu.memory_space<vmem>>, vector<32x64xf32>,
    return
  }
  func.func @transform_0(%arg0: i32, %arg1: i32) -> (i32, i32) {
    %c0_i32 = arith.constant 0 : i32
    %c0_i32_0 = arith.constant 0 : i32
    return %arg0, %c0_i32 : i32, i32
  }
  func.func @transform_1(%arg0: i32, %arg1: i32) -> (i32, i32, i32) {
    %c0_i32 = arith.constant 0 : i32
    %c0_i32_0 = arith.constant 0 : i32
    %c0_i32_1 = arith.constant 0 : i32
    return %arg1, %c0_i32, %c0_i32_0 : i32, i32, i32
  }
  func.func @transform_2(%arg0: i32, %arg1: i32) -> (i32, i32, i32) {
    %c0_i32 = arith.constant 0 : i32
    %c0_i32_0 = arith.constant 0 : i32
    %c0_i32_1 = arith.constant 0 : i32
    return %arg1, %c0_i32, %c0_i32_0 : i32, i32, i32
  }
  func.func @transform_3(%arg0: i32, %arg1: i32) -> (i32, i32, i32) {
    %c0_i32 = arith.constant 0 : i32
    %c0_i32_0 = arith.constant 0 : i32
    %c0_i32_1 = arith.constant 0 : i32
    return %arg1, %c0_i32, %c0_i32_0 : i32, i32, i32
  }
  func.func @transform_4(%arg0: i32, %arg1: i32) -> (i32, i32, i32) {
    %c0_i32 = arith.constant 0 : i32
    %c0_i32_0 = arith.constant 0 : i32
    %c0_i32_1 = arith.constant 0 : i32
    return %arg1, %c0_i32, %c0_i32_0 : i32, i32, i32
  }
  func.func @transform_5(%arg0: i32, %arg1: i32) -> (i32, i32, i32, i32) {
    %c0_i32 = arith.constant 0 : i32
    %c0_i32_0 = arith.constant 0 : i32
    %c0_i32_1 = arith.constant 0 : i32
    %c0_i32_2 = arith.constant 0 : i32
    return %arg1, %c0_i32, %c0_i32_0, %c0_i32_1 : i32, i32, i32, i32
  }
  func.func @transform_6(%arg0: i32, %arg1: i32) -> (i32, i32, i32, i32) {
    %c0_i32 = arith.constant 0 : i32
    %c0_i32_0 = arith.constant 0 : i32
    %c0_i32_1 = arith.constant 0 : i32
    %c0_i32_2 = arith.constant 0 : i32
    return %arg1, %c0_i32, %c0_i32_0, %c0_i32_1 : i32, i32, i32, i32
  }
  func.func @transform_7(%arg0: i32, %arg1: i32) -> (i32, i32, i32, i32) {
    %c0_i32 = arith.constant 0 : i32
    %c0_i32_0 = arith.constant 0 : i32
    %c0_i32_1 = arith.constant 0 : i32
    %c0_i32_2 = arith.constant 0 : i32
    return %arg1, %c0_i32, %c0_i32_0, %c0_i32_1 : i32, i32, i32, i32
  }
  func.func @transform_8(%arg0: i32, %arg1: i32) -> (i32, i32, i32, i32) {
    %c0_i32 = arith.constant 0 : i32
    %c0_i32_0 = arith.constant 0 : i32
    %c0_i32_1 = arith.constant 0 : i32
    %c0_i32_2 = arith.constant 0 : i32
    return %arg1, %c0_i32, %c0_i32_0, %c0_i32_1 : i32, i32, i32, i32
  }
  func.func @transform_9(%arg0: i32, %arg1: i32) -> (i32, i32, i32, i32) {
    %c0_i32 = arith.constant 0 : i32
    %c0_i32_0 = arith.constant 0 : i32
    %c0_i32_1 = arith.constant 0 : i32
    %c0_i32_2 = arith.constant 0 : i32
    return %arg1, %c0_i32, %c0_i32_0, %c0_i32_1 : i32, i32, i32, i32
  }
  func.func @transform_10(%arg0: i32, %arg1: i32) -> (i32, i32, i32, i32) {
    %c0_i32 = arith.constant 0 : i32
    %c0_i32_0 = arith.constant 0 : i32
    %c0_i32_1 = arith.constant 0 : i32
    %c0_i32_2 = arith.constant 0 : i32
    return %arg1, %c0_i32, %c0_i32_0, %c0_i32_1 : i32, i32, i32, i32
  }
  func.func @transform_11(%arg0: i32, %arg1: i32) -> (i32, i32, i32, i32) {
    %c0_i32 = arith.constant 0 : i32
    %c0_i32_0 = arith.constant 0 : i32
    %c0_i32_1 = arith.constant 0 : i32
    %c0_i32_2 = arith.constant 0 : i32
    return %arg1, %c0_i32, %c0_i32_0, %c0_i32_1 : i32, i32, i32, i32
  }
  func.func @transform_12(%arg0: i32, %arg1: i32) -> (i32, i32, i32) {
    %c0_i32 = arith.constant 0 : i32
    %c0_i32_0 = arith.constant 0 : i32
    %c0_i32_1 = arith.constant 0 : i32
    return %arg1, %c0_i32, %c0_i32_0 : i32, i32, i32
  }
  func.func @transform_13(%arg0: i32, %arg1: i32) -> (i32, i32, i32) {
    %c0_i32 = arith.constant 0 : i32
    %c0_i32_0 = arith.constant 0 : i32
    %c0_i32_1 = arith.constant 0 : i32
    return %arg1, %c0_i32, %c0_i32_0 : i32, i32, i32
  }
  func.func @transform_14(%arg0: i32, %arg1: i32) -> (i32, i32, i32) {
    %c0_i32 = arith.constant 0 : i32
    %c0_i32_0 = arith.constant 0 : i32
    %c0_i32_1 = arith.constant 0 : i32
    return %arg1, %c0_i32, %c0_i32_0 : i32, i32, i32
  }
  func.func @transform_15(%arg0: i32, %arg1: i32) -> (i32, i32, i32) {
    %c0_i32 = arith.constant 0 : i32
    %c0_i32_0 = arith.constant 0 : i32
    %c0_i32_1 = arith.constant 0 : i32
    return %arg1, %c0_i32, %c0_i32_0 : i32, i32, i32
  }
  func.func @transform_16(%arg0: i32, %arg1: i32) -> (i32, i32, i32) {
    %c0_i32 = arith.constant 0 : i32
    %c0_i32_0 = arith.constant 0 : i32
    %c0_i32_1 = arith.constant 0 : i32
    return %arg1, %c0_i32, %c0_i32_0 : i32, i32, i32
  }
  func.func @transform_17(%arg0: i32, %arg1: i32) -> (i32, i32) {
    %c0_i32 = arith.constant 0 : i32
    %c0_i32_0 = arith.constant 0 : i32
    return %arg0, %c0_i32 : i32, i32
  }
}

</mosaic_0001>

<bundles_post_ra>
// kernel: tpu_custom_call.1
= control target key start
LH: loop header
LB: loop body
LE: loop exit
PB: predicated region body
PF: predicated region fallthrough
CT: control target
= control target key end

     0   :  { %s4128_s0 = inlined_call_operand.vmem [shape: bf16[32,64], index: 0, kind: input, shape index: {}]   ;;  %s4129_s1 = inlined_call_operand.vmem [shape: f32[2,1,64], index: 1, kind: input, shape index: {}]   ;;  %s4130_s2 = inlined_call_operand.vmem [shape: f32[2,1,64], index: 2, kind: input, shape index: {}]   ;;  %s4131_s3 = inlined_call_operand.vmem [shape: f32[2,1,64], index: 3, kind: input, shape index: {}]   ;;  %s4132_s4 = inlined_call_operand.vmem [shape: f32[2,1,64], index: 4, kind: input, shape index: {}]   ;;  %s4133_s5 = inlined_call_operand.vmem [shape: bf16[2,2,64,32], index: 5, kind: input, shape index: {}]   ;;  %s4134_s6 = inlined_call_operand.vmem [shape: f32[2,2,1,32], index: 6, kind: input, shape index: {}]   ;;  %s4135_s7 = inlined_call_operand.vmem [shape: bf16[2,2,64,32], index: 7, kind: input, shape index: {}]   ;;  %s4136_s8 = inlined_call_operand.vmem [shape: f32[2,2,1,32], index: 8, kind: input, shape index: {}]   ;;  %s4137_s9 = inlined_call_operand.vmem [shape: bf16[2,2,64,32], index: 9, kind: input, shape index: {}]   ;;  %s4138_s10 = inlined_call_operand.vmem [shape: f32[2,2,1,32], index: 10, kind: input, shape index: {}]   ;;  %s4139_s11 = inlined_call_operand.vmem [shape: bf16[2,2,32,64], index: 11, kind: input, shape index: {}]   ;;  %s4140_s12 = inlined_call_operand.vmem [shape: f32[2,1,64], index: 12, kind: input, shape index: {}]   ;;  %s4141_s13 = inlined_call_operand.vmem [shape: bf16[2,64,256], index: 13, kind: input, shape index: {}]   ;;  %s4142_s14 = inlined_call_operand.vmem [shape: f32[2,1,256], index: 14, kind: input, shape index: {}]   ;;  %s4143_s15 = inlined_call_operand.vmem [shape: bf16[2,256,64], index: 15, kind: input, shape index: {}]   ;;  %s4144_s16 = inlined_call_operand.vmem [shape: f32[2,1,64], index: 16, kind: input, shape index: {}]   ;;  %s4145_s17 = inlined_call_operand.hbm [shape: f32[32,64], index: 17, kind: output, shape index: {}]  }
   0x1   :  { %4151 = sst [smem:[#allocation10_spill]] %s4128_s0 }
   0x2   :  { %4152 = sst [smem:[#allocation11_spill]] %s4129_s1 }
   0x3   :  { %4153 = sst [smem:[#allocation12_spill]] %s4131_s3 }
   0x4   :  { %4154 = sst [smem:[#allocation13_spill]] %s4132_s4 }
   0x5   :  { %4155 = sst [smem:[#allocation14_spill]] %s4133_s5 }
   0x6   :  { %4156 = sst [smem:[#allocation15_spill]] %s4134_s6 }
   0x7   :  { %4157 = sst [smem:[#allocation16_spill]] %s4135_s7 }
   0x8   :  { %4158 = sst [smem:[#allocation17_spill]] %s4136_s8 }
   0x9   :  { %4159 = sst [smem:[#allocation18_spill]] %s4137_s9 }
   0xa   :  { %4160 = sst [smem:[#allocation19_spill]] %s4138_s10 }
   0xb   :  { %4161 = sst [smem:[#allocation20_spill]] %s4145_s17 }
   0xc   :  { %22 = vsyncpa [#allocation3], 0  ;;  %s3398_s24 = smov 0   ;;  %s3400_s25 = smov 0  }
   0xd   :  { %s3402_s26 = smov 0  }
   0xe LB: > { %4162 = sst [smem:[#allocation5_spill]] %s3294_s24  ;;  %s37_s28 = sadd.s32 1, %s3298_s25  ;;  %s3302_s26 = sphi %s3402_s26, %s28_s26   ;;  %s3298_s25 = sphi %s3400_s25, %s4202_s25   ;;  %s3294_s24 = sphi %s3398_s24, %s4201_s24  }
   0xf   : > { %4163 = sst [smem:[#allocation6_spill]] %s3298_s25  ;;  %p38_p0 = scmp.ge.s32.totalorder %s37_s28, 2 }
  0x10   : > { %4164 = sst [smem:[#allocation7_spill]] %s3302_s26  ;;  %p2768_p1 = scmp.ge.s32.totalorder %s3302_s26, 1 }
  0x11   : > { %p645_p2 = scmp.lt.s32.totalorder %s3302_s26, 3  ;;  %s4204_s28 = smov (%p38_p0, %s37_s28), 0 }
  0x12   : > { %4165 = sst [smem:[#allocation8_spill]] %s4204_s28 }
  0x13   : > { %p646_p3 = pnand %p2768_p1, %p645_p2 }
  0x15   : > { %649 = sbr.rel (%p646_p3) target bundleno = 2272 (0x8e0), region = 88 }
  0x1a   : > { %p762_p4 = scmp.lt.s32.totalorder %s3294_s24, 1  ;;  %s4169_s5 = sld [smem:[#allocation14_spill]] }
  0x1b   : > { %s4170_s6 = sld [smem:[#allocation15_spill]] }
  0x1c   : > { %s3421_s29 = scalar_select %p762_p4, %s3294_s24, 1 }
  0x1d   : > { %s4171_s7 = sld [smem:[#allocation16_spill]] }
  0x1e   : > { %s3065_s30 = sshll.u32 %s3421_s29, 6  ;;  %s3441_s17 = sshll.u32 %s3421_s29, 1 }
  0x1f   : > { %s4172_s8 = sld [smem:[#allocation17_spill]]  ;;  %s3068_s20 = sshll.u32 %s3421_s29, 5 }
  0x20   : > { %s3446_s18 = scalar_lea.vmem %s4169_s5, %s3065_s30  ;;  %s4173_s9 = sld [smem:[#allocation18_spill]] }
  0x21   : > { %s3452_s22 = scalar_lea.vmem %s4170_s6, %s3441_s17  ;;  %s4174_s10 = sld [smem:[#allocation19_spill]] }
  0x22   : > { %s3484_s27 = scalar_lea.vmem %s4139_s11, %s3068_s20  ;;  %s3489_s21 = scalar_lea.vmem %s4141_s13, %s3065_s30 }
  0x23   : > { %s3457_s23 = scalar_lea.vmem %s4171_s7, %s3065_s30  ;;  %s817_s4 = scalar_lea.vmem %s4142_s14, %s3441_s17 }
  0x24   : > { %s3070_s5 = sshll.u32 %s3421_s29, 7  ;;  %s825_s3 = scalar_lea.vmem %s4144_s16, %s3421_s29 }
  0x25   : > { %s3463_s24 = scalar_lea.vmem %s4172_s8, %s3441_s17  ;;  %s3499_s6 = scalar_lea.vmem %s4143_s15, %s3070_s5 }
  0x26   : > { %s3468_s19 = scalar_lea.vmem %s4173_s9, %s3065_s30  ;;  %s4176_s7 = sld [smem:[#allocation5_spill]] }
  0x27   : > { %s3474_s1 = scalar_lea.vmem %s4174_s10, %s3441_s17 }
  0x28   : > { %4175 = sst [smem:[#allocation9_spill]] %s3474_s1 }
  0x2c   : > { %p2785_p5 = scmp.ne.s32.totalorder %s4176_s7, 0 }
  0x2d   : > { %s4177_s20 = sld [smem:[#allocation10_spill]] (!%p2785_p5) }
  0x2e   : > { %831 = sbr.rel (%p2785_p5) target bundleno = 58 (0x3a), region = 92 }
  0x33   : > { %v3124_v0 = vld [vmem:[%s4177_s20] sm:$0xff]   ;;  %vm840_vm0 = vcmask 523264   ;;  %v3131_v1 = vld [vmem:[%s4177_s20 + $0x8] sm:$0xff]  }
  0x34   : > { %v3125_v2 = vunpack.c.l.bf16 %v3124_v0  ;;  %v3126_v3 = vunpack.c.h.bf16 %v3124_v0  ;;  %v3129_v4 = vunpack.c.l.bf16 %v3131_v1  ;;  %v3130_v5 = vunpack.c.h.bf16 %v3131_v1 }
  0x36   : > { %841 = vst.msk [vmem:[#allocation2] sm:$0xff] %vm840_vm0, %v3125_v2 }
  0x37   : > { %842 = vst.msk [vmem:[#allocation2 + $0x8] sm:$0xff] %vm840_vm0, %v3126_v3 }
  0x38   : > { %843 = vst.msk [vmem:[#allocation2 + $0x10] sm:$0xff] %vm840_vm0, %v3129_v4 }
  0x39   : > { %844 = vst.msk [vmem:[#allocation2 + $0x18] sm:$0xff] %vm840_vm0, %v3130_v5 }
  0x3a PF: > { %vm858_vm1 = vcmask 523264   ;;  %v3304_v14 = vmov 64.0   ;;  %v3074_v41 = vld [vmem:[%s3446_s18 + $0x18] sm:$0xff]  ;;  %v3073_v43 = vld [vmem:[%s3446_s18 + $0x10] sm:$0xff]  ;;  %v3072_v45 = vld [vmem:[%s3446_s18 + $0x8] sm:$0xff]  ;;  %s4178_s28 = sld [smem:[#allocation11_spill]]  ;;  %s4180_s7 = scalar_lea.vmem %s4130_s2, %s3421_s29 }
  0x3b   : > { %3182 = vrcp.f32 %v3304_v14  ;;  %v3082_v42 = vld [vmem:[%s3468_s19 + $0x18] sm:$0xff]  ;;  %1016 = vmatpush.bf16.msra.mxu0 %v3074_v41  ;;  %3132 = vmatpush.bf16.msra.mxu1 %v3074_v41  ;;  %v3081_v44 = vld [vmem:[%s3468_s19 + $0x10] sm:$0xff]  ;;  %v3080_v46 = vld [vmem:[%s3468_s19 + $0x8] sm:$0xff]  ;;  %s4181_s8 = sld [smem:[#allocation9_spill]]  ;;  %vm1163_vm15 = vcmask 261120  }
  0x3c   : > { %1134 = vmatpush.bf16.msra.mxu2 %v3082_v42  ;;  %v3071_v53 = vld [vmem:[%s3446_s18] sm:$0xff]  ;;  %v3078_v55 = vld [vmem:[%s3457_s23 + $0x18] sm:$0xff]  ;;  %v3077_v60 = vld [vmem:[%s3457_s23 + $0x10] sm:$0xff]  ;;  %s4185_s0 = sld [smem:[#allocation13_spill]] }
  0x3d   : > { %v845_v7 = vld [vmem:[#allocation2] sm:$0xff]  ;;  %v3076_v3 = vld [vmem:[%s3457_s23 + $0x8] sm:$0xff]  ;;  %s4198_s25 = sld [smem:[#allocation20_spill]] }
  0x3e   : > { %v859_v9 = vsel %vm858_vm1, %v845_v7, 0.0  ;;  %v846_v11 = vld [vmem:[#allocation2 + $0x8] sm:$0xff]  ;;  %v3079_v54 = vld [vmem:[%s3468_s19] sm:$0xff] }
  0x3f   : > { %v847_v6 = vld [vmem:[#allocation2 + $0x10] sm:$0xff]  ;;  %860 = vadd.xlane.f32.xlu1 %v859_v9  ;;  %v862_v13 = vsel %vm858_vm1, %v846_v11, 0.0  ;;  %1017 = vmatpush.bf16.msra.mxu0 %v3073_v43 }
  0x40   : > { %v865_v8 = vsel %vm858_vm1, %v847_v6, 0.0  ;;  %v848_v10 = vld [vmem:[#allocation2 + $0x18] sm:$0xff]  ;;  %3133 = vmatpush.bf16.msra.mxu1 %v3073_v43  ;;  %1135 = vmatpush.bf16.msra.mxu2 %v3081_v44  ;;  %s4179_s26 = scalar_lea.vmem %s4178_s28, %s3421_s29 }
  0x41   : > { %866 = vadd.xlane.f32.xlu0 %v865_v8  ;;  %v868_v12 = vsel %vm858_vm1, %v848_v10, 0.0  ;;  %v3183_v15 = vpop.eup %3182  ;;  %v3075_v8 = vld [vmem:[%s3457_s23] sm:$0xff] }
  0x42   : > { %v872_v16 = vmul.f32 64.0, %v3183_v15  ;;  %vm876_vm2 = vweird.f32 %v3183_v15  ;;  %s4186_s10 = scalar_lea.vmem %s4185_s0, %s3421_s29 }
  0x43   : > { %1018 = vmatpush.bf16.msra.mxu0 %v3072_v45 }
  0x44   : > { %v873_v17 = vsub.f32 1.0, %v872_v16  ;;  %3134 = vmatpush.bf16.msra.mxu1 %v3072_v45  ;;  %1136 = vmatpush.bf16.msra.mxu2 %v3080_v46 }
  0x46   : > { %v874_v18 = vmul.f32 %v3183_v15, %v873_v17 }
  0x47   : > { %863 = vadd.xlane.f32.xlu1 %v862_v13  ;;  %1019 = vmatpush.bf16.msra.mxu0 %v3071_v53 }
  0x48   : > { %v875_v19 = vadd.f32 %v3183_v15, %v874_v18  ;;  %3135 = vmatpush.bf16.msra.mxu1 %v3071_v53  ;;  %1137 = vmatpush.bf16.msra.mxu2 %v3079_v54 }
  0x49   : > { %869 = vadd.xlane.f32.xlu0 %v868_v12 }
  0x4a   : > { %v3516_v20 = vsel %vm876_vm2, %v3183_v15, %v875_v19  ;;  %vm1226_vm2 = vcmask 130048  }
  0x4c   : > { %1075 = vmatpush.bf16.msrb.mxu1 %v3078_v55 }
  0x50   : > { %1076 = vmatpush.bf16.msrb.mxu1 %v3077_v60 }
  0x54   : > { %1077 = vmatpush.bf16.msrb.mxu1 %v3076_v3 }
  0x58   : > { %1078 = vmatpush.bf16.msrb.mxu1 %v3075_v8 }
  0xb2   : > { %v861_v22 = vpop.xlane.xlu1 %860 }
  0xb3   : > { %v878_v24 = vmul.f32 %v3516_v20, %v861_v22 }
  0xb4   : > { %v867_v21 = vpop.xlane.xlu0 %866 }
  0xb5   : > { %v880_v23 = vmul.f32 %v3516_v20, %v867_v21  ;;  %v3522_v26 = vsub.f32 %v845_v7, %v878_v24 }
  0xb7   : > { %v3520_v25 = vsub.f32 %v847_v6, %v880_v23  ;;  %v886_v28 = vmul.f32 %v3522_v26, %v3522_v26 }
  0xb9   : > { %v888_v27 = vmul.f32 %v3520_v25, %v3520_v25  ;;  %v890_v30 = vsel %vm858_vm1, %v886_v28, 0.0 }
  0xba   : > { %891 = vadd.xlane.f32.xlu0 %v890_v30  ;;  %v864_v32 = vpop.xlane.xlu1 %863 }
  0xbb   : > { %v896_v29 = vsel %vm858_vm1, %v888_v27, 0.0  ;;  %v879_v34 = vmul.f32 %v3516_v20, %v864_v32  ;;  %v3170_v27 = vld [vmem:[%s4179_s26] ss:$0 sm:$0xff] }
  0xbc   : > { %897 = vadd.xlane.f32.xlu2 %v896_v29  ;;  %v870_v31 = vpop.xlane.xlu0 %869 }
  0xbd   : > { %v881_v33 = vmul.f32 %v3516_v20, %v870_v31  ;;  %v3534_v36 = vsub.f32 %v846_v11, %v879_v34  ;;  %v3171_v34 = vld [vmem:[%s4180_s7] ss:$0 sm:$0xff]  ;;  %s2533_s7 = sshll.u32 %s4198_s25, 4  ;;  %s2534_s7 = int_to_ptr.hbm [resolvable:$true] %s2533_s7 }
  0xbf   : > { %v3532_v35 = vsub.f32 %v848_v10, %v881_v33  ;;  %v887_v38 = vmul.f32 %v3534_v36, %v3534_v36 }
  0xc1   : > { %v889_v37 = vmul.f32 %v3532_v35, %v3532_v35  ;;  %v893_v40 = vsel %vm858_vm1, %v887_v38, 0.0 }
  0xc2   : > { %894 = vadd.xlane.f32.xlu1 %v893_v40 }
  0xc3   : > { %v899_v39 = vsel %vm858_vm1, %v889_v37, 0.0 }
  0xc4   : > { %900 = vadd.xlane.f32.xlu2 %v899_v39 }
 0x12d   : > { %v892_v48 = vpop.xlane.xlu0 %891 }
 0x12e   : > { %v902_v50 = vmul.f32 %v892_v48, %v3516_v20  ;;  %v3086_v48 = vld [vmem:[%s3446_s18 + $0x28] sm:$0xff] }
 0x12f   : > { %v898_v47 = vpop.xlane.xlu2 %897 }
 0x130   : > { %v904_v49 = vmul.f32 %v898_v47, %v3516_v20  ;;  %v906_v52 = vadd.f32 1e-05, %v902_v50  ;;  %v3087_v47 = vld [vmem:[%s3446_s18 + $0x30] sm:$0xff] }
 0x132   : > { %v908_v51 = vadd.f32 1e-05, %v904_v49  ;;  %vm916_vm3 = vweird.f32 %v906_v52  ;;  %v3085_v49 = vld [vmem:[%s3446_s18 + $0x20] sm:$0xff] }
 0x134   : > { %3184 = vrsqrt.f32 %v908_v51  ;;  %vm936_vm6 = vweird.f32 %v908_v51 }
 0x135   : > { %3186 = vrsqrt.f32 %v906_v52  ;;  %v895_v57 = vpop.xlane.xlu1 %894 }
 0x136   : > { %v903_v59 = vmul.f32 %v895_v57, %v3516_v20 }
 0x137   : > { %v901_v56 = vpop.xlane.xlu2 %900 }
 0x138   : > { %v905_v58 = vmul.f32 %v901_v56, %v3516_v20  ;;  %v907_v63 = vadd.f32 1e-05, %v903_v59  ;;  %v3174_v56 = vld [vmem:[%s3463_s24] ss:$0 sm:$0xff] }
 0x13a   : > { %v3185_v61 = vpop.eup %3184  ;;  %v909_v62 = vadd.f32 1e-05, %v905_v58  ;;  %vm926_vm9 = vweird.f32 %v907_v63 }
 0x13b   : > { %v3187_v0 = vpop.eup %3186  ;;  %v931_v1 = vmul.f32 %v3185_v61, %v908_v51  ;;  %vm937_vm5 = vweird.f32 %v3185_v61 }
 0x13c   : > { %v911_v2 = vmul.f32 %v3187_v0, %v906_v52  ;;  %3188 = vrsqrt.f32 %v909_v62  ;;  %vm917_vm4 = vweird.f32 %v3187_v0  ;;  %vm938_vm8 = vmor %vm936_vm6, %vm937_vm5  ;;  %vm946_vm12 = vweird.f32 %v909_v62 }
 0x13d   : > { %v932_v4 = vmul.f32 %v3185_v61, %v931_v1  ;;  %3190 = vrsqrt.f32 %v907_v63  ;;  %vm918_vm7 = vmor %vm916_vm3, %vm917_vm4 }
 0x13e   : > { %v912_v5 = vmul.f32 %v3187_v0, %v911_v2 }
 0x13f   : > { %v933_v6 = vmul.f32 0.5, %v932_v4 }
 0x140   : > { %v913_v7 = vmul.f32 0.5, %v912_v5 }
 0x141   : > { %v934_v9 = vsub.f32 1.5, %v933_v6 }
 0x142   : > { %v3189_v10 = vpop.eup %3188  ;;  %v914_v11 = vsub.f32 1.5, %v913_v7 }
 0x143   : > { %v3191_v12 = vpop.eup %3190  ;;  %v935_v13 = vmul.f32 %v3185_v61, %v934_v9  ;;  %v941_v14 = vmul.f32 %v3189_v10, %v909_v62  ;;  %vm947_vm11 = vweird.f32 %v3189_v10 }
 0x144   : > { %v915_v15 = vmul.f32 %v3187_v0, %v914_v11  ;;  %v921_v16 = vmul.f32 %v3191_v12, %v907_v63  ;;  %vm927_vm10 = vweird.f32 %v3191_v12  ;;  %vm948_vm14 = vmor %vm946_vm12, %vm947_vm11 }
 0x145   : > { %v942_v17 = vmul.f32 %v3189_v10, %v941_v14  ;;  %v939_v19 = vsel %vm938_vm8, %v3185_v61, %v935_v13  ;;  %vm928_vm13 = vmor %vm926_vm9, %vm927_vm10  ;;  %v3172_v61 = vld [vmem:[%s3452_s22] ss:$0 sm:$0xff] }
 0x146   : > { %v922_v18 = vmul.f32 %v3191_v12, %v921_v16  ;;  %v919_v22 = vsel %vm918_vm7, %v3187_v0, %v915_v15  ;;  %v952_v28 = vmul.f32 %v939_v19, %v3520_v25  ;;  %v3173_v0 = vld [vmem:[%s4181_s8] ss:$0 sm:$0xff] }
 0x147   : > { %v943_v21 = vmul.f32 0.5, %v942_v17  ;;  %v950_v30 = vmul.f32 %v919_v22, %v3522_v26 }
 0x148   : > { %v923_v23 = vmul.f32 0.5, %v922_v18  ;;  %v959_v37 = vmul.f32 %v3170_v27, %v952_v28  ;;  %v3091_v18 = vld [vmem:[%s3457_s23 + $0x30] sm:$0xff] }
 0x149   : > { %v944_v24 = vsub.f32 1.5, %v943_v21  ;;  %v957_v25 = vmul.f32 %v3170_v27, %v950_v30  ;;  %v3090_v30 = vld [vmem:[%s3457_s23 + $0x28] sm:$0xff] }
 0x14a   : > { %v924_v29 = vsub.f32 1.5, %v923_v23  ;;  %v3572_v42 = vadd.f32 %v3171_v34, %v959_v37 }
 0x14b   : > { %v945_v31 = vmul.f32 %v3189_v10, %v944_v24  ;;  %v3576_v44 = vadd.f32 %v3171_v34, %v957_v25  ;;  %v3089_v25 = vld [vmem:[%s3457_s23 + $0x20] sm:$0xff] }
 0x14c   : > { %v925_v32 = vmul.f32 %v3191_v12, %v924_v29 }
 0x14d   : > { %v949_v33 = vsel %vm948_vm14, %v3189_v10, %v945_v31  ;;  %v3092_v10 = vld [vmem:[%s3457_s23 + $0x38] sm:$0xff] }
 0x14e   : > { %v953_v38 = vmul.f32 %v949_v33, %v3532_v35  ;;  %v929_v39 = vsel %vm928_vm13, %v3191_v12, %v925_v32 }
 0x14f   : > { %v951_v26 = vmul.f32 %v929_v39, %v3534_v36  ;;  %v3088_v36 = vld [vmem:[%s3446_s18 + $0x38] sm:$0xff]  ;;  %s3307_s18 = smov 8  }
 0x150   : > { %v960_v40 = vmul.f32 %v3170_v27, %v953_v38 }
 0x151   : > { %v958_v41 = vmul.f32 %v3170_v27, %v951_v26 }
 0x152   : > { %v3574_v43 = vadd.f32 %v3171_v34, %v960_v40 }
 0x153   : > { %v3578_v45 = vadd.f32 %v3171_v34, %v958_v41 }
 0x154   : > { %v3582_v35 = vpack.c.bf16 %v3574_v43, %v3572_v42 }
 0x155   : > { %v3586_v46 = vpack.c.bf16 %v3578_v45, %v3576_v44 }
 0x156   : > { %2803 = vmatmul.msk.bf16.vlgmr.msra.gmra.mxu1 %vm858_vm1, %v3582_v35 }
 0x157   : > { %2802 = vmatmul.msk.bf16.vlgmr.msra.gmra.mxu0 %vm858_vm1, %v3586_v46  ;;  %2838 = vmatmul.msk.bf16.vlgmr.msra.gmra.mxu2 %vm858_vm1, %v3586_v46 }
 0x158   : > { %1379 = vmatpush.bf16.msra.mxu1 %v3088_v36 }
 0x15c   : > { %1380 = vmatpush.bf16.msra.mxu1 %v3087_v47 }
 0x160   : > { %1381 = vmatpush.bf16.msra.mxu1 %v3086_v48 }
 0x164   : > { %1382 = vmatpush.bf16.msra.mxu1 %v3085_v49 }
 0x166   : > { %2820 = vmatmul.msk.bf16.vlgmr.msrb.gmra.mxu1 %vm858_vm1, %v3586_v46 }
 0x167   : > { %2839 = vmatmul.msk.bf16.gmra.mxu2 %vm858_vm1, %v3582_v35 }
 0x176   : > { %2821 = vmatmul.msk.bf16.gmra.mxu1 %vm858_vm1, %v3582_v35 }
 0x186   : > { %2869 = vmatmul.msk.bf16.vlgmr.msra.gmra.mxu1 %vm858_vm1, %v3586_v46 }
 0x196   : > { %2870 = vmatmul.msk.bf16.gmra.mxu1 %vm858_vm1, %v3582_v35 }
 0x1d3   : > { %v1026_v50 = vpop.f32.mrf.mxu1 }
 0x1d4   : > { %v1021_v53 = vpop.f32.mrf.mxu0  ;;  %v1027_v26 = vadd.f32 %v3172_v61, %v1026_v50 }
 0x1d5   : > { %v1022_v4 = vadd.f32 %v3172_v61, %v1021_v53 }
 0x1d7   : > { %v1031_v14 = vpack.c.bf16 %v1022_v4, %v1022_v4 }
 0x1d9   : > { %v1155_v22 = vunpack.c.l.b16 %v1031_v14 }
 0x1da   : > { %v1139_v51 = vpop.f32.mrf.mxu2 }
 0x1db   : > { %v1028_v52 = vpop.f32.mrf.mxu1  ;;  %v1140_v28 = vadd.f32 %v3173_v0, %v1139_v51  ;;  %v1033_v51 = vpack.c.bf16 %v1027_v26, %v1027_v26 }
 0x1dc   : > { %v1023_v59 = vpop.f32.mrf.mxu0  ;;  %v1029_v38 = vadd.f32 %v3172_v61, %v1028_v52 }
 0x1dd   : > { %v1024_v1 = vadd.f32 %v3172_v61, %v1023_v59  ;;  %v1149_v37 = vpack.c.bf16 %v1140_v28, %v1140_v28  ;;  %v1186_v52 = vunpack.c.l.b16 %v1033_v51 }
 0x1de   : > { %v1034_v48 = vpack.c.bf16 %v1029_v38, %v1029_v38 }
 0x1df   : > { %v1032_v7 = vpack.c.bf16 %v1024_v1, %v1024_v1  ;;  %v1282_v47 = vunpack.c.l.b16 %v1149_v37 }
 0x1e1   : > { %v1156_v17 = vunpack.c.l.b16 %v1032_v7 }
 0x1e2   : > { %v1141_v54 = vpop.f32.mrf.mxu2 }
 0x1e3   : > { %v1080_v55 = vpop.f32.mrf.mxu1  ;;  %v1142_v23 = vadd.f32 %v3173_v0, %v1141_v54  ;;  %v1157_v29 = vpack.c.b16 %v1156_v17, %v1155_v22 }
 0x1e4   : > { %v1081_v57 = vadd.f32 %v3174_v56, %v1080_v55  ;;  %v1187_v55 = vunpack.c.l.b16 %v1034_v48 }
 0x1e5   : > { %v1150_v32 = vpack.c.bf16 %v1142_v23, %v1142_v23 }
 0x1e6   : > { %v1090_v62 = vpack.c.bf16 %v1081_v57, %v1081_v57 }
 0x1e7   : > { %v1283_v40 = vunpack.c.l.b16 %v1150_v32 }
 0x1e8   : > { %v1160_v5 = vunpack.c.l.b16 %v1090_v62 }
 0x1e9   : > { %v1284_v54 = vpack.c.b16 %v1283_v40, %v1282_v47 }
 0x1ea   : > { %v1144_v58 = vpop.f32.mrf.mxu2 }
 0x1eb   : > { %v1082_v60 = vpop.f32.mrf.mxu1  ;;  %v1145_v3 = vadd.f32 %v3173_v0, %v1144_v58  ;;  %v849_v58 = vlaneseq }
 0x1ec   : > { %v1083_v63 = vadd.f32 %v3174_v56, %v1082_v60 }
 0x1ed   : > { %v1151_v11 = vpack.c.bf16 %v1145_v3, %v1145_v3  ;;  %v3623_v59 = vshrl.u32 %v849_v58, 7  ;;  %v3625_v60 = vand.u32 127, %v849_v58 }
 0x1ee   : > { %v1091_v2 = vpack.c.bf16 %v1083_v63, %v1083_v63 }
 0x1ef   : > { %v1310_v19 = vunpack.c.l.b16 %v1151_v11  ;;  %vm854_vm0 = vcmp.le.s32.totalorder %v3625_v60, %v3623_v59  ;;  %v3638_v4 = vadd.s32 8, %v3623_v59 }
 0x1f0   : > { %v1161_v6 = vunpack.c.l.b16 %v1091_v2 }
 0x1f1   : > { %vm855_vm3 = vcmp.le.s32.totalorder %v3625_v60, %v3638_v4 }
 0x1f2   : > { %v1146_v8 = vpop.f32.mrf.mxu2  ;;  %v1162_v9 = vpack.c.b16 %v1161_v6, %v1160_v5 }
 0x1f3   : > { %v1147_v12 = vadd.f32 %v3173_v0, %v1146_v8  ;;  %v1085_v13 = vpop.f32.mrf.mxu1  ;;  %v3628_v0 = vld [vmem:[%s3463_s24 + $0x1] ss:$0 sm:$0xff] }
 0x1f4   : > { %v1168_v15 = vsel %vm1163_vm15, %v1162_v9, 0  ;;  %v1086_v24 = vadd.f32 %v3174_v56, %v1085_v13 }
 0x1f5   : > { %v1152_v16 = vpack.c.bf16 %v1147_v12, %v1147_v12  ;;  %1177 = vmatpush.bf16.xpose.msrb.mxu2 %v1168_v15 }
 0x1f6   : > { %v1092_v33 = vpack.c.bf16 %v1086_v24, %v1086_v24 }
 0x1f7   : > { %v1311_v21 = vunpack.c.l.b16 %v1152_v16 }
 0x1f8   : > { %v1191_v41 = vunpack.c.l.b16 %v1092_v33 }
 0x1f9   : > { %v1312_v27 = vpack.c.b16 %v1311_v21, %v1310_v19 }
 0x1fb   : > { %1324 = vmatpush.bf16.msrb.mxu0 %v1312_v27  ;;  %v1087_v31 = vpop.f32.mrf.mxu1 }
 0x1fc   : > { %v1088_v34 = vadd.f32 %v3174_v56, %v1087_v31  ;;  %2840 = vmatmul.msk.bf16.vlgmr.msrb.gmra.mxu2 %vm1163_vm15, %v1157_v29  ;;  %v1188_v56 = vpack.c.b16 %v1187_v55, %v1186_v52 }
 0x1fd   : > { %1440 = vmatpush.bf16.msra.mxu2 %v3092_v10 }
 0x1fe   : > { %v1093_v39 = vpack.c.bf16 %v1088_v34, %v1088_v34 }
 0x200   : > { %v1192_v36 = vunpack.c.l.b16 %v1093_v39 }
 0x201   : > { %1441 = vmatpush.bf16.msra.mxu2 %v3091_v18 }
 0x202   : > { %v1193_v49 = vpack.c.b16 %v1192_v36, %v1191_v41 }
 0x204   : > { %v1198_v53 = vsel %vm1163_vm15, %v1193_v49, 0 }
 0x205   : > { %1442 = vmatpush.bf16.msra.mxu2 %v3090_v30  ;;  %1207 = vmatpush.bf16.xpose.msra.mxu3 %v1198_v53 }
 0x209   : > { %1443 = vmatpush.bf16.msra.mxu2 %v3089_v25 }
 0x20c   : > { %2841 = vmatmul.msk.bf16.vlgmr.msra.gmra.mxu3 %vm1163_vm15, %v1188_v56  ;;  %2896 = vmatmul.msk.bf16.vlgmr.msra.gmra.mxu2 %vm858_vm1, %v3586_v46 }
 0x20d   : > { %1296 = vmatpush.bf16.msrb.mxu3 %v1284_v54  ;;  %v1384_v54 = vpop.f32.mrf.mxu1 }
 0x21c   : > { %2897 = vmatmul.msk.bf16.gmra.mxu2 %vm858_vm1, %v3582_v35 }
 0x27f   : > { %v1179_v50 = vpop.f32.mrf.mxu2 }
 0x280   : > { %v1214_v13 = vmul.f32 0.17677669, %v1179_v50 }
 0x282   : > { %v1222_v18 = vsel %vm854_vm0, %v1214_v13, -1e+30 }
 0x283   : > { %v1227_v19 = vsel %vm1226_vm2, %v1222_v18, -inf }
 0x287   : > { %v1181_v57 = vpop.f32.mrf.mxu2 }
 0x288   : > { %v1215_v31 = vmul.f32 0.17677669, %v1181_v57 }
 0x28a   : > { %v1223_v34 = vsel %vm855_vm3, %v1215_v31, -1e+30 }
 0x28b   : > { %v1230_v25 = vsel %vm1226_vm2, %v1223_v34, -inf }
 0x28f   : > { %v1209_v61 = vpop.f32.mrf.mxu3  ;;  %v1445_v62 = vpop.f32.mrf.mxu2 }
 0x290   : > { %v1216_v63 = vmul.f32 0.17677669, %v1209_v61  ;;  %v1446_v3 = vadd.f32 %v3628_v0, %v1445_v62 }
 0x292   : > { %v1224_v1 = vsel %vm854_vm0, %v1216_v63, -1e+30  ;;  %v1455_v7 = vpack.c.bf16 %v1446_v3, %v1446_v3 }
 0x293   : > { %v1233_v2 = vsel %vm1226_vm2, %v1224_v1, -inf }
 0x294   : > { %1234 = vmax.xlane.f32.xlu2 %v1233_v2  ;;  %v1527_v14 = vunpack.c.l.b16 %v1455_v7 }
 0x297   : > { %v1211_v5 = vpop.f32.mrf.mxu3  ;;  %v1447_v6 = vpop.f32.mrf.mxu2 }
 0x298   : > { %v1217_v8 = vmul.f32 0.17677669, %v1211_v5  ;;  %v1448_v9 = vadd.f32 %v3628_v0, %v1447_v6  ;;  %v1386_v6 = vpop.f32.mrf.mxu1 }
 0x29a   : > { %v1456_v10 = vpack.c.bf16 %v1448_v9, %v1448_v9  ;;  %v1225_v11 = vsel %vm855_vm3, %v1217_v8, -1e+30 }
 0x29b   : > { %v1236_v12 = vsel %vm1226_vm2, %v1225_v11, -inf }
 0x29c   : > { %v1528_v15 = vunpack.c.l.b16 %v1456_v10  ;;  %1237 = vmax.xlane.f32.xlu0 %v1236_v12 }
 0x29e   : > { %v1529_v16 = vpack.c.b16 %v1528_v15, %v1527_v14 }
 0x29f   : > { %v1450_v41 = vpop.f32.mrf.mxu2 }
 0x2a0   : > { %v1534_v17 = vsel %vm1163_vm15, %v1529_v16, 0  ;;  %v1451_v52 = vadd.f32 %v3628_v0, %v1450_v41  ;;  %v1389_v15 = vpop.f32.mrf.mxu1 }
 0x2a1   : > { %1543 = vmatpush.bf16.xpose.msra.mxu0 %v1534_v17 }
 0x2a2   : > { %v1457_v58 = vpack.c.bf16 %v1451_v52, %v1451_v52 }
 0x2a4   : > { %1228 = vmax.xlane.f32.xlu0 %v1227_v19  ;;  %v1557_v2 = vunpack.c.l.b16 %v1457_v58 }
 0x2a7   : > { %v1452_v47 = vpop.f32.mrf.mxu2 }
 0x2a8   : > { %v1453_v48 = vadd.f32 %v3628_v0, %v1452_v47 }
 0x2aa   : > { %v1458_v50 = vpack.c.bf16 %v1453_v48, %v1453_v48 }
 0x2ac   : > { %v1558_v62 = vunpack.c.l.b16 %v1458_v50 }
 0x2ae   : > { %v1559_v7 = vpack.c.b16 %v1558_v62, %v1557_v2 }
 0x2b0   : > { %v1564_v12 = vsel %vm1163_vm15, %v1559_v7, 0 }
 0x307   : > { %v1235_v21 = vpop.xlane.xlu2 %1234 }
 0x308   : > { %v1241_v22 = vsub.f32 %v1224_v1, %v1235_v21 }
 0x30a   : > { %v1247_v23 = vmul.f32 1.442695, %v1241_v22  ;;  %v1391_v22 = vpop.f32.mrf.mxu1 }
 0x30c   : > { %3192 = vpow2.f32 %v1247_v23 }
 0x30f   : > { %v1238_v24 = vpop.xlane.xlu0 %1237 }
 0x310   : > { %v1242_v27 = vsub.f32 %v1225_v11, %v1238_v24  ;;  %v3175_v11 = vld [vmem:[%s3452_s22 + $0x1] ss:$0 sm:$0xff]  ;;  %s4182_s22 = scalar_lea.vmem %s4140_s12, %s3421_s29 }
 0x311   : > { %v1387_v13 = vadd.f32 %v3175_v11, %v1386_v6  ;;  %v1385_v14 = vadd.f32 %v3175_v11, %v1384_v54  ;;  %v1392_v23 = vadd.f32 %v3175_v11, %v1391_v22  ;;  %v1390_v24 = vadd.f32 %v3175_v11, %v1389_v15 }
 0x312   : > { %v3193_v28 = vpop.eup %3192  ;;  %v1249_v29 = vmul.f32 1.442695, %v1242_v27 }
 0x313   : > { %v1257_v30 = vsel %vm1226_vm2, %v3193_v28, 0.0  ;;  %v1395_v16 = vpack.c.bf16 %v1387_v13, %v1387_v13  ;;  %v1394_v17 = vpack.c.bf16 %v1385_v14, %v1385_v14  ;;  %v1397_v27 = vpack.c.bf16 %v1392_v23, %v1392_v23 }
 0x314   : > { %3194 = vpow2.f32 %v1249_v29  ;;  %1258 = vadd.xlane.f32.xlu1 %v1257_v30 }
 0x315   : > { %v1522_v19 = vunpack.c.l.b16 %v1394_v17  ;;  %v1553_v29 = vunpack.c.l.b16 %v1397_v27 }
 0x317   : > { %v1229_v32 = vpop.xlane.xlu0 %1228 }
 0x318   : > { %v1239_v33 = vsub.f32 %v1222_v18, %v1229_v32  ;;  %v1523_v18 = vunpack.c.l.b16 %v1395_v16  ;;  %v3096_v32 = vld [vmem:[%s3468_s19 + $0x38] sm:$0xff] }
 0x319   : > { %1501 = vmatpush.bf16.msra.mxu3 %v3096_v32 }
 0x31a   : > { %v3195_v37 = vpop.eup %3194  ;;  %v1243_v38 = vmul.f32 1.442695, %v1239_v33  ;;  %v1524_v21 = vpack.c.b16 %v1523_v18, %v1522_v19  ;;  %v3095_v33 = vld [vmem:[%s3468_s19 + $0x30] sm:$0xff]  ;;  %v3177_v18 = vld [vmem:[%s4181_s8 + $0x1] ss:$0 sm:$0xff] }
 0x31b   : > { %v1260_v39 = vsel %vm1226_vm2, %v3195_v37, 0.0 }
 0x31c   : > { %3196 = vpow2.f32 %v1243_v38  ;;  %1261 = vadd.xlane.f32.xlu2 %v1260_v39  ;;  %1231 = vmax.xlane.f32.xlu1 %v1230_v25  ;;  %v3093_v38 = vld [vmem:[%s3468_s19 + $0x20] sm:$0xff] }
 0x31d   : > { %1502 = vmatpush.bf16.msra.mxu3 %v3095_v33 }
 0x322   : > { %v3658_v26 = vpop.eup %3196 }
 0x323   : > { %v1251_v40 = vsel %vm1226_vm2, %v3658_v26, 0.0 }
 0x324   : > { %1252 = vadd.xlane.f32.xlu2 %v1251_v40 }
 0x387   : > { %v1259_v36 = vpop.xlane.xlu1 %1258 }
 0x388   : > { %3198 = vrcp.f32 %v1259_v36 }
 0x38e   : > { %v3199_v53 = vpop.eup %3198 }
 0x38f   : > { %v1262_v49 = vpop.xlane.xlu2 %1261  ;;  %v1232_v51 = vpop.xlane.xlu1 %1231  ;;  %v1269_v57 = vmul.f32 %v3199_v53, %v3193_v28  ;;  %v1396_v28 = vpack.c.bf16 %v1390_v24, %v1390_v24 }
 0x390   : > { %3200 = vrcp.f32 %v1262_v49  ;;  %v1240_v55 = vsub.f32 %v1223_v34, %v1232_v51  ;;  %v3094_v34 = vld [vmem:[%s3468_s19 + $0x28] sm:$0xff]  ;;  %s3306_s19 = smov 128  }
 0x391   : > { %v1273_v63 = vpack.c.bf16 %v1269_v57, %v1269_v57  ;;  %v1552_v30 = vunpack.c.l.b16 %v1396_v28  ;;  %1503 = vmatpush.bf16.msra.mxu3 %v3094_v34 }
 0x392   : > { %v1245_v56 = vmul.f32 1.442695, %v1240_v55 }
 0x393   : > { %v1305_v8 = vunpack.c.l.b16 %v1273_v63  ;;  %v1554_v31 = vpack.c.b16 %v1553_v29, %v1552_v30 }
 0x394   : > { %3202 = vpow2.f32 %v1245_v56 }
 0x395   : > { %1504 = vmatpush.bf16.msra.mxu3 %v3093_v38 }
 0x396   : > { %v3201_v61 = vpop.eup %3200 }
 0x397   : > { %v1270_v1 = vmul.f32 %v3201_v61, %v3195_v37  ;;  %v1253_v37 = vpop.xlane.xlu2 %1252 }
 0x398   : > { %3204 = vrcp.f32 %v1253_v37 }
 0x399   : > { %v1274_v3 = vpack.c.bf16 %v1270_v1, %v1270_v1 }
 0x39a   : > { %v3203_v5 = vpop.eup %3202 }
 0x39b   : > { %v1306_v9 = vunpack.c.l.b16 %v1274_v3  ;;  %v1254_v10 = vsel %vm1226_vm2, %v3203_v5, 0.0 }
 0x39c   : > { %1255 = vadd.xlane.f32.xlu0 %v1254_v10  ;;  %v3083_v10 = vld [vmem:[%s3484_s27] sm:$0xff] }
 0x39d   : > { %v1307_v0 = vpack.c.b16 %v1306_v9, %v1305_v8  ;;  %v3084_v9 = vld [vmem:[%s3484_s27 + $0x8] sm:$0xff] }
 0x39e   : > { %v3205_v25 = vpop.eup %3204 }
 0x39f   : > { %2843 = vmatmul.msk.bf16.vlgmr.msrb.gmra.mxu0 %vm1226_vm2, %v1307_v0  ;;  %v1267_v40 = vmul.f32 %v3205_v25, %v3658_v26 }
 0x3a0   : > { %1573 = vmatpush.bf16.xpose.msrb.mxu0 %v1564_v12 }
 0x3a1   : > { %v1271_v36 = vpack.c.bf16 %v1267_v40, %v1267_v40 }
 0x3a3   : > { %v1277_v49 = vunpack.c.l.b16 %v1271_v36 }
 0x3af   : > { %2925 = vmatmul.msk.bf16.vlgmr.msra.gmra.mxu0 %vm1163_vm15, %v1524_v21 }
 0x3b0   : > { %1760 = vmatpush.bf16.msra.mxu0 %v3084_v9 }
 0x3b4   : > { %1761 = vmatpush.bf16.msra.mxu0 %v3083_v10 }
 0x3bf   : > { %2926 = vmatmul.msk.bf16.vlgmr.msrb.gmra.mxu0 %vm1163_vm15, %v1554_v31 }
 0x40f   : > { %v1256_v39 = vpop.xlane.xlu0 %1255 }
 0x410   : > { %3206 = vrcp.f32 %v1256_v39 }
 0x416   : > { %v3207_v41 = vpop.eup %3206 }
 0x417   : > { %v1268_v47 = vmul.f32 %v3207_v41, %v3203_v5 }
 0x419   : > { %v1272_v48 = vpack.c.bf16 %v1268_v47, %v1268_v47 }
 0x41b   : > { %v1278_v51 = vunpack.c.l.b16 %v1272_v48 }
 0x41c   : > { %v3675_v53 = vpop.f32.mrf.mxu0 }
 0x41d   : > { %v1279_v54 = vpack.c.b16 %v1278_v51, %v1277_v49 }
 0x41f   : > { %2842 = vmatmul.msk.bf16.vlgmr.msrb.gmra.mxu3 %vm1226_vm2, %v1279_v54 }
 0x424   : > { %v1328_v55 = vpop.f32.mrf.mxu0 }
 0x425   : > { %v1332_v52 = vpack.c.bf16 %v1328_v55, %v3675_v53 }
 0x42c   : > { %v1545_v56 = vpop.f32.mrf.mxu0 }
 0x42d   : > { %v1580_v50 = vmul.f32 0.17677669, %v1545_v56 }
 0x42f   : > { %2923 = vmatmul.msk.bf16.vlgmr.msra.gmra.mxu3 %vm858_vm1, %v3586_v46  ;;  %v1584_v26 = vsel %vm854_vm0, %v1580_v50, -1e+30 }
 0x430   : > { %v1588_v57 = vsel %vm1226_vm2, %v1584_v26, -inf }
 0x431   : > { %1589 = vmax.xlane.f32.xlu1 %v1588_v57  ;;  %v3098_v57 = vld [vmem:[%s3484_s27 + $0x18] sm:$0xff] }
 0x432   : > { %1723 = vmatpush.bf16.msrb.mxu3 %v3098_v57 }
 0x434   : > { %v1547_v58 = vpop.f32.mrf.mxu0 }
 0x435   : > { %v1581_v61 = vmul.f32 0.17677669, %v1547_v58 }
 0x437   : > { %v1585_v62 = vsel %vm855_vm3, %v1581_v61, -1e+30 }
 0x438   : > { %v1591_v63 = vsel %vm1226_vm2, %v1585_v62, -inf }
 0x439   : > { %1592 = vmax.xlane.f32.xlu2 %v1591_v63 }
 0x43c   : > { %v1575_v1 = vpop.f32.mrf.mxu0 }
 0x43d   : > { %v1582_v46 = vmul.f32 0.17677669, %v1575_v1 }
 0x43f   : > { %2924 = vmatmul.msk.bf16.gmra.mxu3 %vm858_vm1, %v3582_v35  ;;  %v1586_v2 = vsel %vm854_vm0, %v1582_v46, -1e+30 }
 0x440   : > { %v1594_v3 = vsel %vm1226_vm2, %v1586_v2, -inf }
 0x441   : > { %1595 = vmax.xlane.f32.xlu0 %v1594_v3 }
 0x444   : > { %v1577_v5 = vpop.f32.mrf.mxu0 }
 0x445   : > { %v1583_v6 = vmul.f32 0.17677669, %v1577_v5 }
 0x447   : > { %v1587_v7 = vsel %vm855_vm3, %v1583_v6, -1e+30 }
 0x448   : > { %v1597_v8 = vsel %vm1226_vm2, %v1587_v7, -inf }
 0x449   : > { %1598 = vmax.xlane.f32.xlu1 %v1597_v8 }
 0x4a2   : > { %v1298_v35 = vpop.f32.mrf.mxu3 }
 0x4a4   : > { %v1590_v59 = vpop.xlane.xlu1 %1589 }
 0x4a5   : > { %v1600_v0 = vsub.f32 %v1584_v26, %v1590_v59 }
 0x4a7   : > { %v1604_v11 = vmul.f32 1.442695, %v1600_v0 }
 0x4a9   : > { %3208 = vpow2.f32 %v1604_v11 }
 0x4aa   : > { %v1300_v12 = vpop.f32.mrf.mxu3 }
 0x4ab   : > { %v1331_v13 = vpack.c.bf16 %v1300_v12, %v1298_v35 }
 0x4ac   : > { %v1593_v14 = vpop.xlane.xlu2 %1592 }
 0x4ad   : > { %v1601_v15 = vsub.f32 %v1585_v62, %v1593_v14  ;;  %2951 = vmatmul.msk.bf16.vlgmr.msra.gmra.mxu0 %vm1163_vm15, %v1331_v13  ;;  %v3097_v14 = vld [vmem:[%s3484_s27 + $0x10] sm:$0xff]  ;;  %s4183_s27 = sld [smem:[#allocation12_spill]] }
 0x4ae   : > { %1724 = vmatpush.bf16.msrb.mxu3 %v3097_v14 }
 0x4af   : > { %v3209_v60 = vpop.eup %3208  ;;  %v1606_v4 = vmul.f32 1.442695, %v1601_v15 }
 0x4b0   : > { %v1612_v16 = vsel %vm1226_vm2, %v3209_v60, 0.0 }
 0x4b1   : > { %3210 = vpow2.f32 %v1606_v4  ;;  %1613 = vadd.xlane.f32.xlu2 %v1612_v16 }
 0x4b2   : > { %v1506_v17 = vpop.f32.mrf.mxu3 }
 0x4b3   : > { %v1507_v23 = vadd.f32 %v3177_v18, %v1506_v17 }
 0x4b4   : > { %v1596_v19 = vpop.xlane.xlu0 %1595 }
 0x4b5   : > { %v1602_v21 = vsub.f32 %v1586_v2, %v1596_v19  ;;  %v1516_v29 = vpack.c.bf16 %v1507_v23, %v1507_v23 }
 0x4b7   : > { %v3211_v22 = vpop.eup %3210  ;;  %v1608_v24 = vmul.f32 1.442695, %v1602_v21  ;;  %v1643_v37 = vunpack.c.l.b16 %v1516_v29  ;;  %v3178_v21 = vld [vmem:[%s4182_s22] ss:$0 sm:$0xff] }
 0x4b8   : > { %v1615_v27 = vsel %vm1226_vm2, %v3211_v22, 0.0 }
 0x4b9   : > { %3212 = vpow2.f32 %v1608_v24  ;;  %1616 = vadd.xlane.f32.xlu0 %v1615_v27 }
 0x4ba   : > { %v1508_v28 = vpop.f32.mrf.mxu3 }
 0x4bb   : > { %v1509_v30 = vadd.f32 %v3177_v18, %v1508_v28 }
 0x4bc   : > { %v1599_v31 = vpop.xlane.xlu1 %1598 }
 0x4bd   : > { %v1517_v32 = vpack.c.bf16 %v1509_v30, %v1509_v30  ;;  %v1603_v33 = vsub.f32 %v1587_v7, %v1599_v31  ;;  %2952 = vmatmul.msk.bf16.gmra.mxu0 %vm1163_vm15, %v1332_v52 }
 0x4bf   : > { %v3213_v34 = vpop.eup %3212  ;;  %v1644_v38 = vunpack.c.l.b16 %v1517_v32  ;;  %v1610_v39 = vmul.f32 1.442695, %v1603_v33 }
 0x4c0   : > { %v1618_v25 = vsel %vm1226_vm2, %v3213_v34, 0.0 }
 0x4c1   : > { %v1645_v40 = vpack.c.b16 %v1644_v38, %v1643_v37  ;;  %3214 = vpow2.f32 %v1610_v39  ;;  %1619 = vadd.xlane.f32.xlu1 %v1618_v25 }
 0x4c2   : > { %v1511_v41 = vpop.f32.mrf.mxu3 }
 0x4c3   : > { %1657 = vmatpush.bf16.msrb.mxu1 %v1645_v40  ;;  %v1512_v47 = vadd.f32 %v3177_v18, %v1511_v41 }
 0x4c5   : > { %v1518_v51 = vpack.c.bf16 %v1512_v47, %v1512_v47 }
 0x4c7   : > { %v3215_v36 = vpop.eup %3214  ;;  %v1671_v55 = vunpack.c.l.b16 %v1518_v51 }
 0x4c8   : > { %v1621_v48 = vsel %vm1226_vm2, %v3215_v36, 0.0 }
 0x4c9   : > { %1622 = vadd.xlane.f32.xlu2 %v1621_v48 }
 0x4ca   : > { %v1513_v49 = vpop.f32.mrf.mxu3 }
 0x4cb   : > { %v1514_v53 = vadd.f32 %v3177_v18, %v1513_v49 }
 0x4cd   : > { %v1519_v54 = vpack.c.bf16 %v1514_v53, %v1514_v53 }
 0x4cf   : > { %v1672_v52 = vunpack.c.l.b16 %v1519_v54 }
 0x4d1   : > { %v1673_v56 = vpack.c.b16 %v1672_v52, %v1671_v55 }
 0x4d3   : > { %1685 = vmatpush.bf16.msrb.mxu2 %v1673_v56 }
 0x524   : > { %v1614_v50 = vpop.xlane.xlu2 %1613 }
 0x525   : > { %3216 = vrcp.f32 %v1614_v50 }
 0x52a   : > { %v1763_v19 = vpop.f32.mrf.mxu0 }
 0x52b   : > { %v3217_v58 = vpop.eup %3216 }
 0x52c   : > { %v1617_v26 = vpop.xlane.xlu0 %1616  ;;  %v1628_v61 = vmul.f32 %v3217_v58, %v3209_v60 }
 0x52d   : > { %3218 = vrcp.f32 %v1617_v26 }
 0x52e   : > { %v1632_v63 = vpack.c.bf16 %v1628_v61, %v1628_v61 }
 0x530   : > { %v1638_v3 = vunpack.c.l.b16 %v1632_v63 }
 0x532   : > { %v1765_v29 = vpop.f32.mrf.mxu0 }
 0x533   : > { %v3219_v62 = vpop.eup %3218 }
 0x534   : > { %v1629_v1 = vmul.f32 %v3219_v62, %v3211_v22  ;;  %v1620_v46 = vpop.xlane.xlu1 %1619 }
 0x535   : > { %3220 = vrcp.f32 %v1620_v46 }
 0x536   : > { %v1633_v2 = vpack.c.bf16 %v1629_v1, %v1629_v1 }
 0x538   : > { %v1639_v5 = vunpack.c.l.b16 %v1633_v2 }
 0x53a   : > { %v1640_v6 = vpack.c.b16 %v1639_v5, %v1638_v3  ;;  %v1768_v37 = vpop.f32.mrf.mxu0 }
 0x53b   : > { %v3221_v8 = vpop.eup %3220 }
 0x53c   : > { %2927 = vmatmul.msk.bf16.vlgmr.msrb.gmra.mxu1 %vm1226_vm2, %v1640_v6  ;;  %v1623_v7 = vpop.xlane.xlu2 %1622  ;;  %v1630_v9 = vmul.f32 %v3221_v8, %v3213_v34  ;;  %v2979_v6 = vld [vmem:[%s3489_s21 + $0x30] sm:$0xf]  ;;  %v3105_v8 = vld [vmem:[%s3489_s21 + $0x34] sm:$0xf] }
 0x53d   : > { %3222 = vrcp.f32 %v1623_v7  ;;  %v3106_v7 = vld [vmem:[%s3489_s21 + $0x34] sm:$0xf0] }
 0x53e   : > { %v1634_v35 = vpack.c.bf16 %v1630_v9, %v1630_v9  ;;  %v2980_v9 = vor.u32 %v3106_v7, %v2979_v6 }
 0x540   : > { %v1666_v11 = vunpack.c.l.b16 %v1634_v35  ;;  %1955 = vmatpush.bf16.msra.mxu1 %v2980_v9 }
 0x542   : > { %v1770_v41 = vpop.f32.mrf.mxu0 }
 0x543   : > { %v3223_v10 = vpop.eup %3222 }
 0x544   : > { %v1631_v59 = vmul.f32 %v3223_v10, %v3215_v36  ;;  %v2981_v10 = vld [vmem:[%s3489_s21 + $0x38] sm:$0xf0] }
 0x545   : > { %v2984_v35 = vor.u32 %v3105_v8, %v2981_v10 }
 0x546   : > { %v1635_v0 = vpack.c.bf16 %v1631_v59, %v1631_v59  ;;  %v2971_v59 = vld [vmem:[%s3489_s21 + $0x20] sm:$0xf] }
 0x547   : > { %1974 = vmatpush.bf16.msra.mxu2 %v2984_v35 }
 0x548   : > { %v1667_v12 = vunpack.c.l.b16 %v1635_v0  ;;  %v3104_v0 = vld [vmem:[%s3489_s21 + $0x24] sm:$0xf0] }
 0x54a   : > { %v1668_v13 = vpack.c.b16 %v1667_v12, %v1666_v11  ;;  %v3103_v11 = vld [vmem:[%s3489_s21 + $0x24] sm:$0xf]  ;;  %v2972_v12 = vor.u32 %v3104_v0, %v2971_v59 }
 0x54c   : > { %2928 = vmatmul.msk.bf16.vlgmr.msrb.gmra.mxu2 %vm1226_vm2, %v1668_v13  ;;  %v2973_v13 = vld [vmem:[%s3489_s21 + $0x28] sm:$0xf0]  ;;  %1956 = vmatpush.bf16.msra.mxu1 %v2972_v12 }
 0x54d   : > { %v2976_v14 = vor.u32 %v3103_v11, %v2973_v13 }
 0x54f   : > { %1975 = vmatpush.bf16.msra.mxu2 %v2976_v14 }
 0x5b9   : > { %v1659_v15 = vpop.f32.mrf.mxu1 }
 0x5c1   : > { %v1661_v60 = vpop.f32.mrf.mxu1 }
 0x5c2   : > { %v1692_v4 = vpack.c.bf16 %v1661_v60, %v1659_v15  ;;  %v2963_v15 = vld [vmem:[%s3489_s21 + $0x10] sm:$0xf]  ;;  %v3102_v60 = vld [vmem:[%s3489_s21 + $0x14] sm:$0xf0] }
 0x5c4   : > { %2941 = vmatmul.msk.bf16.vlgmr.msrb.gmra.mxu3 %vm1163_vm15, %v1692_v4  ;;  %v3101_v4 = vld [vmem:[%s3489_s21 + $0x14] sm:$0xf] }
 0x5cf   : > { %v1687_v16 = vpop.f32.mrf.mxu2 }
 0x5d7   : > { %v1689_v17 = vpop.f32.mrf.mxu2 }
 0x5d8   : > { %v1693_v18 = vpack.c.bf16 %v1689_v17, %v1687_v16  ;;  %v2964_v16 = vor.u32 %v3102_v60, %v2963_v15  ;;  %v2965_v17 = vld [vmem:[%s3489_s21 + $0x18] sm:$0xf0] }
 0x5da   : > { %2942 = vmatmul.msk.bf16.gmra.mxu3 %vm1163_vm15, %v1693_v18  ;;  %1957 = vmatpush.bf16.msra.mxu1 %v2964_v16 }
 0x647   : > { %v1726_v22 = vpop.f32.mrf.mxu3 }
 0x648   : > { %v1764_v23 = vadd.f32 %v1763_v19, %v1726_v22  ;;  %v2968_v19 = vor.u32 %v3101_v4, %v2965_v17  ;;  %v2955_v22 = vld [vmem:[%s3489_s21] sm:$0xf] }
 0x64a   : > { %v1777_v24 = vadd.f32 %v3178_v21, %v1764_v23  ;;  %1976 = vmatpush.bf16.msra.mxu2 %v2968_v19  ;;  %v3100_v23 = vld [vmem:[%s3489_s21 + $0x4] sm:$0xf0] }
 0x64c   : > { %v3720_v27 = vadd.f32 %v1777_v24, %v3576_v44  ;;  %v3099_v24 = vld [vmem:[%s3489_s21 + $0x4] sm:$0xf] }
 0x64e   : > { %v1787_v28 = vsel %vm858_vm1, %v3720_v27, 0.0 }
 0x64f   : > { %1788 = vadd.xlane.f32.xlu0 %v1787_v28  ;;  %v1728_v30 = vpop.f32.mrf.mxu3 }
 0x650   : > { %v1766_v31 = vadd.f32 %v1765_v29, %v1728_v30  ;;  %v2956_v29 = vor.u32 %v3100_v23, %v2955_v22  ;;  %v2957_v30 = vld [vmem:[%s3489_s21 + $0x8] sm:$0xf0]  ;;  %s4184_s21 = scalar_lea.vmem %s4183_s27, %s3421_s29  ;;  %s3305_s29 = smov [#allocation2]  }
 0x652   : > { %v1778_v32 = vadd.f32 %v3178_v21, %v1766_v31  ;;  %v2960_v31 = vor.u32 %v3099_v24, %v2957_v30  ;;  %1958 = vmatpush.bf16.msra.mxu1 %v2956_v29 }
 0x654   : > { %v3725_v33 = vadd.f32 %v1778_v32, %v3578_v45  ;;  %1977 = vmatpush.bf16.msra.mxu2 %v2960_v31 }
 0x656   : > { %v1790_v34 = vsel %vm858_vm1, %v3725_v33, 0.0 }
 0x657   : > { %1791 = vadd.xlane.f32.xlu1 %v1790_v34 }
 0x65d   : > { %v1731_v38 = vpop.f32.mrf.mxu3 }
 0x65e   : > { %v1769_v39 = vadd.f32 %v1768_v37, %v1731_v38 }
 0x660   : > { %v1779_v44 = vadd.f32 %v3178_v21, %v1769_v39 }
 0x662   : > { %v3730_v25 = vadd.f32 %v1779_v44, %v3572_v42 }
 0x664   : > { %v1793_v40 = vsel %vm858_vm1, %v3730_v25, 0.0 }
 0x665   : > { %1794 = vadd.xlane.f32.xlu2 %v1793_v40  ;;  %v1733_v36 = vpop.f32.mrf.mxu3 }
 0x666   : > { %v1771_v47 = vadd.f32 %v1770_v41, %v1733_v36 }
 0x668   : > { %v1780_v45 = vadd.f32 %v3178_v21, %v1771_v47 }
 0x66a   : > { %v3735_v48 = vadd.f32 %v1780_v45, %v3574_v43 }
 0x66c   : > { %v1796_v49 = vsel %vm858_vm1, %v3735_v48, 0.0 }
 0x66d   : > { %1797 = vadd.xlane.f32.xlu0 %v1796_v49 }
 0x6c2   : > { %v1789_v51 = vpop.xlane.xlu0 %1788 }
 0x6c3   : > { %v1799_v53 = vmul.f32 %v1789_v51, %v3516_v20 }
 0x6c5   : > { %v3741_v42 = vsub.f32 %v3720_v27, %v1799_v53 }
 0x6c7   : > { %v1807_v54 = vmul.f32 %v3741_v42, %v3741_v42 }
 0x6c9   : > { %v1811_v55 = vsel %vm858_vm1, %v1807_v54, 0.0 }
 0x6ca   : > { %1812 = vadd.xlane.f32.xlu1 %v1811_v55  ;;  %v1792_v52 = vpop.xlane.xlu1 %1791 }
 0x6cb   : > { %v1800_v43 = vmul.f32 %v1792_v52, %v3516_v20 }
 0x6cd   : > { %v3748_v56 = vsub.f32 %v3725_v33, %v1800_v43 }
 0x6cf   : > { %v1808_v50 = vmul.f32 %v3748_v56, %v3748_v56 }
 0x6d1   : > { %v1814_v26 = vsel %vm858_vm1, %v1808_v50, 0.0  ;;  %v3179_v50 = vld [vmem:[%s4184_s21] ss:$0 sm:$0xff] }
 0x6d2   : > { %1815 = vadd.xlane.f32.xlu2 %v1814_v26 }
 0x6d8   : > { %v1795_v57 = vpop.xlane.xlu2 %1794 }
 0x6d9   : > { %v1801_v58 = vmul.f32 %v1795_v57, %v3516_v20 }
 0x6db   : > { %v3755_v61 = vsub.f32 %v3730_v25, %v1801_v58 }
 0x6dd   : > { %v1809_v62 = vmul.f32 %v3755_v61, %v3755_v61 }
 0x6df   : > { %v1817_v63 = vsel %vm858_vm1, %v1809_v62, 0.0 }
 0x6e0   : > { %1818 = vadd.xlane.f32.xlu0 %v1817_v63  ;;  %v1798_v1 = vpop.xlane.xlu0 %1797  ;;  %v3180_v63 = vld [vmem:[%s4186_s10] ss:$0 sm:$0xff] }
 0x6e1   : > { %v1802_v46 = vmul.f32 %v1798_v1, %v3516_v20 }
 0x6e3   : > { %v3762_v2 = vsub.f32 %v3735_v48, %v1802_v46 }
 0x6e5   : > { %v1810_v3 = vmul.f32 %v3762_v2, %v3762_v2 }
 0x6e7   : > { %v1820_v5 = vsel %vm858_vm1, %v1810_v3, 0.0 }
 0x6e8   : > { %1821 = vadd.xlane.f32.xlu1 %v1820_v5 }
 0x73d   : > { %v1813_v18 = vpop.xlane.xlu1 %1812 }
 0x73e   : > { %v1823_v21 = vmul.f32 %v1813_v18, %v3516_v20 }
 0x740   : > { %v1827_v28 = vadd.f32 1e-05, %v1823_v21 }
 0x742   : > { %3224 = vrsqrt.f32 %v1827_v28  ;;  %vm1837_vm5 = vweird.f32 %v1827_v28 }
 0x745   : > { %v1816_v32 = vpop.xlane.xlu2 %1815 }
 0x746   : > { %v1824_v34 = vmul.f32 %v1816_v32, %v3516_v20 }
 0x748   : > { %v3225_v37 = vpop.eup %3224  ;;  %v1828_v38 = vadd.f32 1e-05, %v1824_v34 }
 0x749   : > { %v1832_v39 = vmul.f32 %v3225_v37, %v1827_v28  ;;  %vm1838_vm4 = vweird.f32 %v3225_v37 }
 0x74a   : > { %3226 = vrsqrt.f32 %v1828_v38  ;;  %vm1839_vm6 = vmor %vm1837_vm5, %vm1838_vm4  ;;  %vm1847_vm8 = vweird.f32 %v1828_v38 }
 0x74b   : > { %v1833_v44 = vmul.f32 %v3225_v37, %v1832_v39 }
 0x74d   : > { %v1834_v40 = vmul.f32 0.5, %v1833_v44 }
 0x74f   : > { %v1835_v41 = vsub.f32 1.5, %v1834_v40 }
 0x750   : > { %v3227_v36 = vpop.eup %3226 }
 0x751   : > { %v1836_v47 = vmul.f32 %v3225_v37, %v1835_v41  ;;  %v1842_v45 = vmul.f32 %v3227_v36, %v1828_v38  ;;  %vm1848_vm7 = vweird.f32 %v3227_v36 }
 0x752   : > { %vm1849_vm9 = vmor %vm1847_vm8, %vm1848_vm7 }
 0x753   : > { %v1843_v49 = vmul.f32 %v3227_v36, %v1842_v45  ;;  %v1819_v51 = vpop.xlane.xlu0 %1818  ;;  %v1840_v54 = vsel %vm1839_vm6, %v3225_v37, %v1836_v47 }
 0x754   : > { %v1825_v53 = vmul.f32 %v1819_v51, %v3516_v20  ;;  %v1871_v26 = vmul.f32 %v1840_v54, %v3741_v42 }
 0x755   : > { %v1844_v55 = vmul.f32 0.5, %v1843_v49 }
 0x756   : > { %v1829_v52 = vadd.f32 1e-05, %v1825_v53  ;;  %v1878_v1 = vmul.f32 %v3179_v50, %v1871_v26 }
 0x757   : > { %v1845_v43 = vsub.f32 1.5, %v1844_v55 }
 0x758   : > { %3228 = vrsqrt.f32 %v1829_v52  ;;  %v1885_v8 = vadd.f32 %v3180_v63, %v1878_v1  ;;  %vm1857_vm11 = vweird.f32 %v1829_v52 }
 0x759   : > { %v1846_v57 = vmul.f32 %v3227_v36, %v1845_v43 }
 0x75b   : > { %v1850_v58 = vsel %vm1849_vm9, %v3227_v36, %v1846_v57  ;;  %v1822_v62 = vpop.xlane.xlu1 %1821 }
 0x75c   : > { %v1872_v46 = vmul.f32 %v1850_v58, %v3748_v56  ;;  %v1826_v3 = vmul.f32 %v1822_v62, %v3516_v20 }
 0x75e   : > { %v3229_v5 = vpop.eup %3228  ;;  %v1879_v6 = vmul.f32 %v3179_v50, %v1872_v46  ;;  %v1830_v7 = vadd.f32 1e-05, %v1826_v3 }
 0x75f   : > { %v1852_v42 = vmul.f32 %v3229_v5, %v1829_v52  ;;  %vm1858_vm10 = vweird.f32 %v3229_v5 }
 0x760   : > { %v1886_v9 = vadd.f32 %v3180_v63, %v1879_v6  ;;  %3230 = vrsqrt.f32 %v1830_v7  ;;  %vm1859_vm12 = vmor %vm1857_vm11, %vm1858_vm10  ;;  %vm1867_vm14 = vweird.f32 %v1830_v7 }
 0x761   : > { %v1853_v10 = vmul.f32 %v3229_v5, %v1852_v42 }
 0x762   : > { %v1889_v35 = vpack.c.bf16 %v1886_v9, %v1885_v8 }
 0x763   : > { %v1854_v59 = vmul.f32 0.5, %v1853_v10 }
 0x764   : > { %2985 = vmatmul.msk.bf16.vlgmr.msra.gmra.mxu1 %vm858_vm1, %v1889_v35  ;;  %2987 = vmatmul.msk.bf16.vlgmr.msra.gmra.mxu2 %vm858_vm1, %v1889_v35 }
 0x765   : > { %v1855_v0 = vsub.f32 1.5, %v1854_v59 }
 0x766   : > { %v3231_v11 = vpop.eup %3230 }
 0x767   : > { %v1856_v12 = vmul.f32 %v3229_v5, %v1855_v0  ;;  %v1862_v56 = vmul.f32 %v3231_v11, %v1830_v7  ;;  %vm1868_vm13 = vweird.f32 %v3231_v11 }
 0x768   : > { %vm1869_vm15 = vmor %vm1867_vm14, %vm1868_vm13 }
 0x769   : > { %v1863_v20 = vmul.f32 %v3231_v11, %v1862_v56  ;;  %v1860_v13 = vsel %vm1859_vm12, %v3229_v5, %v1856_v12  ;;  %v3113_v56 = vld [vmem:[%s3499_s6 + $0x30] sm:$0xff] }
 0x76a   : > { %v1873_v60 = vmul.f32 %v1860_v13, %v3755_v61  ;;  %v1899_v61 = vld [vmem:[%s817_s4] sm:$0x3] }
 0x76b   : > { %v1864_v14 = vmul.f32 0.5, %v1863_v20  ;;  %v3810_v24 = vperm.slane %v1899_v61, 0  ;;  %v3818_v30 = vperm.slane %v1899_v61, 1 }
 0x76c   : > { %v1880_v18 = vmul.f32 %v3179_v50, %v1873_v60 }
 0x76d   : > { %v1865_v15 = vsub.f32 1.5, %v1864_v14 }
 0x76e   : > { %v1887_v21 = vadd.f32 %v3180_v63, %v1880_v18 }
 0x76f   : > { %v1866_v4 = vmul.f32 %v3231_v11, %v1865_v15 }
 0x771   : > { %v1870_v16 = vsel %vm1869_vm15, %v3231_v11, %v1866_v4 }
 0x772   : > { %v1874_v17 = vmul.f32 %v1870_v16, %v3762_v2 }
 0x774   : > { %v1881_v19 = vmul.f32 %v3179_v50, %v1874_v17 }
 0x776   : > { %v1888_v22 = vadd.f32 %v3180_v63, %v1881_v19  ;;  %v3114_v63 = vld [vmem:[%s3499_s6 + $0x38] sm:$0xff] }
 0x777   : > { %2477 = vmatpush.bf16.msra.mxu3 %v3114_v63 }
 0x778   : > { %v1890_v23 = vpack.c.bf16 %v1888_v22, %v1887_v21  ;;  %v3122_v22 = vld [vmem:[%s3499_s6 + $0x78] sm:$0xff] }
 0x779   : > { %2496 = vmatpush.bf16.msrb.mxu0 %v3122_v22 }
 0x77a   : > { %2986 = vmatmul.msk.bf16.gmra.mxu1 %vm858_vm1, %v1890_v23  ;;  %2988 = vmatmul.msk.bf16.gmra.mxu2 %vm858_vm1, %v1890_v23 }
 0x77b   : > { %2478 = vmatpush.bf16.msra.mxu3 %v3113_v56 }
 0x7e1   : > { %v1960_v28 = vpop.f32.mrf.mxu1 }
 0x7e2   : > { %v3813_v29 = vadd.f32 %v1960_v28, %v3810_v24 }
 0x7e4   : > { %v3816_v2 = vmul.f32 0.70710677, %v3813_v29 }
 0x7e6   : > { %v2005_v31 = vmul.f32 %v3816_v2, %v3816_v2 }
 0x7e7   : > { %v1979_v32 = vpop.f32.mrf.mxu2 }
 0x7e8   : > { %v3822_v34 = vmin.f32 %v2005_v31, 16.0  ;;  %v3825_v37 = vadd.f32 %v1979_v32, %v3818_v30  ;;  %v3112_v31 = vld [vmem:[%s3499_s6 + $0x28] sm:$0xff] }
 0x7e9   : > { %v1962_v38 = vpop.f32.mrf.mxu1  ;;  %2479 = vmatpush.bf16.msra.mxu3 %v3112_v31 }
 0x7ea   : > { %v2007_v39 = vmul.f32 2.1237322e-06, %v3822_v34  ;;  %v2018_v44 = vmul.f32 3.8918573e-05, %v3822_v34  ;;  %v3830_v40 = vadd.f32 %v1962_v38, %v3810_v24  ;;  %v3833_v41 = vmul.f32 0.70710677, %v3825_v37 }
 0x7ec   : > { %v2008_v36 = vadd.f32 0.00028619796, %v2007_v39  ;;  %v2019_v47 = vadd.f32 0.001143296, %v2018_v44  ;;  %v2045_v45 = vmul.f32 %v3833_v41, %v3833_v41  ;;  %v3838_v49 = vmul.f32 0.70710677, %v3830_v40 }
 0x7ee   : > { %v2009_v51 = vmul.f32 %v2008_v36, %v3822_v34  ;;  %v2020_v53 = vmul.f32 %v2019_v47, %v3822_v34  ;;  %v3842_v54 = vmin.f32 %v2045_v45, 16.0  ;;  %v2085_v55 = vmul.f32 %v3838_v49, %v3838_v49 }
 0x7ef   : > { %v1981_v52 = vpop.f32.mrf.mxu2 }
 0x7f0   : > { %v2010_v43 = vadd.f32 0.0036580483, %v2009_v51  ;;  %v2021_v50 = vadd.f32 0.014752088, %v2020_v53  ;;  %v3847_v26 = vadd.f32 %v1981_v52, %v3818_v30  ;;  %v2047_v57 = vmul.f32 2.1237322e-06, %v3842_v54 }
 0x7f1   : > { %v2058_v58 = vmul.f32 3.8918573e-05, %v3842_v54  ;;  %v3851_v62 = vmin.f32 %v2085_v55, 16.0  ;;  %v3121_v51 = vld [vmem:[%s3499_s6 + $0x70] sm:$0xff] }
 0x7f2   : > { %v2022_v1 = vmul.f32 %v2021_v50, %v3822_v34  ;;  %v3856_v46 = vmul.f32 0.70710677, %v3847_v26  ;;  %v2048_v3 = vadd.f32 0.00028619796, %v2047_v57  ;;  %v2011_v7 = vmul.f32 %v2010_v43, %v3822_v34  ;;  %v3111_v50 = vld [vmem:[%s3499_s6 + $0x20] sm:$0xff]  ;;  %2497 = vmatpush.bf16.msrb.mxu0 %v3121_v51 }
 0x7f3   : > { %v2059_v5 = vadd.f32 0.001143296, %v2058_v58  ;;  %v2087_v6 = vmul.f32 2.1237322e-06, %v3851_v62  ;;  %v2098_v8 = vmul.f32 3.8918573e-05, %v3851_v62  ;;  %2480 = vmatpush.bf16.msra.mxu3 %v3111_v50 }
 0x7f4   : > { %v2023_v42 = vadd.f32 0.112945676, %v2022_v1  ;;  %v2125_v9 = vmul.f32 %v3856_v46, %v3856_v46  ;;  %v2049_v10 = vmul.f32 %v2048_v3, %v3842_v54  ;;  %v2012_v15 = vadd.f32 0.05243302, %v2011_v7 }
 0x7f5   : > { %v2060_v35 = vmul.f32 %v2059_v5, %v3842_v54  ;;  %v2088_v59 = vadd.f32 0.00028619796, %v2087_v6  ;;  %v2099_v11 = vadd.f32 0.001143296, %v2098_v8  ;;  %v3120_v5 = vld [vmem:[%s3499_s6 + $0x68] sm:$0xff] }
 0x7f6   : > { %v2024_v0 = vmul.f32 %v2023_v42, %v3822_v34  ;;  %v3866_v12 = vmin.f32 %v2125_v9, 16.0  ;;  %v2050_v20 = vadd.f32 0.0036580483, %v2049_v10  ;;  %v2013_v55 = vmul.f32 %v2012_v15, %v3822_v34  ;;  %2498 = vmatpush.bf16.msrb.mxu0 %v3120_v5  ;;  %v3119_v15 = vld [vmem:[%s3499_s6 + $0x60] sm:$0xff] }
 0x7f7   : > { %v2061_v13 = vadd.f32 0.014752088, %v2060_v35  ;;  %v2089_v14 = vmul.f32 %v2088_v59, %v3851_v62  ;;  %v2100_v4 = vmul.f32 %v2099_v11, %v3851_v62  ;;  %v1965_v43 = vpop.f32.mrf.mxu1  ;;  %v3110_v35 = vld [vmem:[%s3499_s6 + $0x18] sm:$0xff] }
 0x7f8   : > { %v2025_v60 = vadd.f32 0.4994258, %v2024_v0  ;;  %v2127_v16 = vmul.f32 2.1237322e-06, %v3866_v12  ;;  %v2051_v17 = vmul.f32 %v2050_v20, %v3842_v54  ;;  %v2138_v21 = vmul.f32 3.8918573e-05, %v3866_v12  ;;  %2481 = vmatpush.bf16.msra.mxu3 %v3110_v35 }
 0x7f9   : > { %v2062_v18 = vmul.f32 %v2061_v13, %v3842_v54  ;;  %v2090_v19 = vadd.f32 0.0036580483, %v2089_v14  ;;  %v2101_v61 = vadd.f32 0.014752088, %v2100_v4  ;;  %v3893_v7 = vadd.f32 %v1965_v43, %v3810_v24 }
 0x7fa   : > { %v2026_v23 = vmul.f32 %v2025_v60, %v3822_v34  ;;  %v2128_v28 = vadd.f32 0.00028619796, %v2127_v16  ;;  %v2052_v32 = vadd.f32 0.05243302, %v2051_v17  ;;  %v2139_v44 = vadd.f32 0.001143296, %v2138_v21  ;;  %2499 = vmatpush.bf16.msrb.mxu0 %v3119_v15 }
 0x7fb   : > { %v2063_v38 = vadd.f32 0.112945676, %v2062_v18  ;;  %v2091_v39 = vmul.f32 %v2090_v19, %v3851_v62  ;;  %v2102_v47 = vmul.f32 %v2101_v61, %v3851_v62  ;;  %v2014_v42 = vadd.f32 0.18741608, %v2013_v55  ;;  %v3109_v18 = vld [vmem:[%s3499_s6 + $0x10] sm:$0xff]  ;;  %v3108_v55 = vld [vmem:[%s3499_s6 + $0x8] sm:$0xff] }
 0x7fc   : > { %v3879_v36 = vadd.f32 1.0, %v2026_v23  ;;  %v2129_v45 = vmul.f32 %v2128_v28, %v3866_v12  ;;  %v2140_v52 = vmul.f32 %v2139_v44, %v3866_v12  ;;  %v2053_v57 = vmul.f32 %v2052_v32, %v3842_v54  ;;  %2482 = vmatpush.bf16.msra.mxu3 %v3109_v18 }
 0x7fd   : > { %v2064_v53 = vmul.f32 %v2063_v38, %v3842_v54  ;;  %v2092_v63 = vadd.f32 0.05243302, %v2091_v39  ;;  %v2103_v1 = vadd.f32 0.112945676, %v2102_v47  ;;  %v3906_v4 = vmul.f32 0.70710677, %v3893_v7  ;;  %v1984_v32 = vpop.f32.mrf.mxu2 }
 0x7fe   : > { %3232 = vrcp.f32 %v3879_v36  ;;  %v2130_v3 = vadd.f32 0.0036580483, %v2129_v45  ;;  %v2141_v10 = vadd.f32 0.014752088, %v2140_v52  ;;  %v2054_v59 = vadd.f32 0.18741608, %v2053_v57 }
 0x7ff   : > { %v2065_v58 = vadd.f32 0.4994258, %v2064_v53  ;;  %v2104_v8 = vmul.f32 %v2103_v1, %v3851_v62  ;;  %v2093_v56 = vmul.f32 %v2092_v63, %v3851_v62  ;;  %v2015_v16 = vmul.f32 %v2014_v42, %v3822_v34  ;;  %v3118_v34 = vld [vmem:[%s3499_s6 + $0x58] sm:$0xff]  ;;  %v1967_v47 = vpop.f32.mrf.mxu1  ;;  %v3117_v1 = vld [vmem:[%s3499_s6 + $0x50] sm:$0xff] }
 0x800   : > { %v2131_v9 = vmul.f32 %v2130_v3, %v3866_v12  ;;  %v2142_v14 = vmul.f32 %v2141_v10, %v3866_v12  ;;  %v2037_v17 = vand.u32 2147483647, %v3879_v36  ;;  %v2055_v21 = vmul.f32 %v2054_v59, %v3842_v54  ;;  %2500 = vmatpush.bf16.msrb.mxu0 %v3118_v34  ;;  %2483 = vmatpush.bf16.msra.mxu3 %v3108_v55  ;;  %v3115_v34 = vld [vmem:[%s3499_s6 + $0x40] sm:$0xff] }
 0x801   : > { %v2066_v6 = vmul.f32 %v2065_v58, %v3842_v54  ;;  %v2105_v20 = vadd.f32 0.4994258, %v2104_v8  ;;  %v2039_v61 = vand.u32 2147483648, %v3879_v36  ;;  %v2094_v28 = vadd.f32 0.18741608, %v2093_v56 }
 0x802   : > { %v2132_v13 = vadd.f32 0.05243302, %v2131_v9  ;;  %v2143_v23 = vadd.f32 0.112945676, %v2142_v14  ;;  %v2165_v54 = vmul.f32 %v3906_v4, %v3906_v4  ;;  %v3922_v45 = vmul.f32 0.5, %v3813_v29  ;;  %v3116_v14 = vld [vmem:[%s3499_s6 + $0x48] sm:$0xff] }
 0x803   : > { %v3898_v0 = vadd.f32 1.0, %v2066_v6  ;;  %v2106_v22 = vmul.f32 %v2105_v20, %v3851_v62  ;;  %v2016_v51 = vadd.f32 1.1283791, %v2015_v16  ;;  %vm2033_vm2 = vweird.f32 %v3879_v36 }
 0x804   : > { %v3233_v11 = vpop.eup %3232  ;;  %v2133_v31 = vmul.f32 %v2132_v13, %v3866_v12  ;;  %v2144_v44 = vmul.f32 %v2143_v23, %v3866_v12  ;;  %vm3925_vm3 = vcmp.eq.f32.partialorder %v2037_v17, 8.507059e+37  ;;  %v2056_v50 = vadd.f32 1.1283791, %v2055_v21  ;;  %2501 = vmatpush.bf16.msrb.mxu0 %v3117_v1 }
 0x805   : > { %v2029_v60 = vmul.f32 %v3233_v11, %v3879_v36  ;;  %3234 = vrcp.f32 %v3898_v0  ;;  %vm2034_vm0 = vweird.f32 %v3233_v11  ;;  %v3916_v39 = vadd.f32 1.0, %v2106_v22 }
 0x806   : > { %v3934_v57 = vadd.f32 %v1984_v32, %v3818_v30  ;;  %vm2035_vm4 = vmor %vm2033_vm2, %vm2034_vm0  ;;  %v2040_v29 = vor.u32 1.1754944e-38, %v2039_v61  ;;  %v2134_v58 = vadd.f32 0.18741608, %v2133_v31  ;;  %v3940_v63 = vadd.f32 %v1967_v47, %v3810_v24  ;;  %v3107_v24 = vld [vmem:[%s3499_s6] sm:$0xff]  ;;  %v1986_v32 = vpop.f32.mrf.mxu2  ;;  %s4197_s6 = sld [smem:[#allocation7_spill]] }
 0x807   : > { %v2030_v19 = vsub.f32 1.0, %v2029_v60  ;;  %3236 = vrcp.f32 %v3916_v39  ;;  %v2095_v5 = vmul.f32 %v2094_v28, %v3851_v62  ;;  %v2145_v6 = vadd.f32 0.4994258, %v2144_v44  ;;  %2484 = vmatpush.bf16.msra.mxu3 %v3107_v24 }
 0x808   : > { %v3944_v42 = vmin.f32 %v2165_v54, 16.0  ;;  %v2017_v8 = vmul.f32 %v2016_v51, %v3816_v2  ;;  %v3950_v35 = vmul.f32 0.5, %v3830_v40  ;;  %v3954_v59 = vmul.f32 %v2056_v50, %v3833_v41  ;;  %2502 = vmatpush.bf16.msrb.mxu0 %v3116_v14 }
 0x809   : > { %v2031_v38 = vmul.f32 %v3233_v11, %v2030_v19  ;;  %v2146_v62 = vmul.f32 %v2145_v6, %v3866_v12  ;;  %v3959_v56 = vmul.f32 0.70710677, %v3934_v57  ;;  %v2135_v13 = vmul.f32 %v2134_v58, %v3866_v12 }
 0x80a   : > { %v3964_v40 = vmul.f32 0.70710677, %v3940_v63  ;;  %v2079_v15 = vand.u32 2147483648, %v3898_v0  ;;  %v2096_v60 = vadd.f32 1.1283791, %v2095_v5  ;;  %vm2073_vm5 = vweird.f32 %v3898_v0 }
 0x80b   : > { %v3930_v52 = vpop.eup %3234  ;;  %v2032_v43 = vadd.f32 %v3233_v11, %v2031_v38  ;;  %v3968_v16 = vadd.f32 1.0, %v2146_v62  ;;  %v2167_v17 = vmul.f32 2.1237322e-06, %v3944_v42  ;;  %v2117_v18 = vand.u32 2147483647, %v3916_v39 }
 0x80c   : > { %v2069_v36 = vmul.f32 %v3930_v52, %v3898_v0  ;;  %vm2074_vm6 = vweird.f32 %v3930_v52  ;;  %v2205_v21 = vmul.f32 %v3959_v56, %v3959_v56  ;;  %v2245_v22 = vmul.f32 %v3964_v40, %v3964_v40  ;;  %2503 = vmatpush.bf16.msrb.mxu0 %v3115_v34  ;;  %s4199_s8 = sadd.s32 4294967295, %s4197_s6  }
 0x80d   : > { %v2036_v3 = vsel %vm2035_vm4, %v3233_v11, %v2032_v43  ;;  %v2077_v11 = vand.u32 2147483647, %v3898_v0  ;;  %v3237_v41 = vpop.eup %3236  ;;  %3238 = vrcp.f32 %v3968_v16  ;;  %v2119_v28 = vand.u32 2147483648, %v3916_v39  ;;  %vm3992_vm8 = vmor %vm2073_vm5, %vm2074_vm6  ;;  %p3140_p6 = scmp.eq.s32.totalorder %s4199_s8, 1 }
 0x80e   : > { %v2041_v9 = vsel %vm3925_vm3, %v2040_v29, %v2036_v3  ;;  %v2070_v10 = vsub.f32 1.0, %v2069_v36  ;;  %v2109_v12 = vmul.f32 %v3237_v41, %v3916_v39  ;;  %v2136_v31 = vadd.f32 1.1283791, %v2135_v13 }
 0x80f   : > { %v2042_v2 = vmul.f32 %v2041_v9, %v2017_v8  ;;  %vm3983_vm7 = vcmp.eq.f32.partialorder %v2077_v11, 8.507059e+37  ;;  %v2080_v44 = vor.u32 1.1754944e-38, %v2079_v15  ;;  %v2097_v54 = vmul.f32 %v2096_v60, %v3838_v49 }
 0x810   : > { %v2071_v20 = vmul.f32 %v3930_v52, %v2070_v10  ;;  %v2110_v61 = vsub.f32 1.0, %v2109_v12  ;;  %v2168_v47 = vadd.f32 0.00028619796, %v2167_v17  ;;  %vm2113_vm9 = vweird.f32 %v3916_v39 }
 0x811   : > { %v2989_v23 = vclamps-f32 %v2042_v2, 1.0  ;;  %vm2114_vm10 = vweird.f32 %v3237_v41  ;;  %vm3997_vm11 = vcmp.eq.f32.partialorder %v2117_v18, 8.507059e+37  ;;  %v4004_v43 = vmin.f32 %v2205_v21, 16.0 }
 0x812   : > { %v2072_v19 = vadd.f32 %v3930_v52, %v2071_v20  ;;  %v2111_v53 = vmul.f32 %v3237_v41, %v2110_v61  ;;  %v4006_v50 = vmin.f32 %v2245_v22, 16.0  ;;  %v4009_v0 = vadd.f32 %v1986_v32, %v3818_v30  ;;  %vm2115_vm12 = vmor %vm2113_vm9, %vm2114_vm10 }
 0x813   : > { %v2325_v29 = vadd.f32 1.0, %v2989_v23  ;;  %v2120_v39 = vor.u32 1.1754944e-38, %v2119_v28  ;;  %v2137_v58 = vmul.f32 %v2136_v31, %v3856_v46  ;;  %v3239_v1 = vpop.eup %3238  ;;  %v2169_v3 = vmul.f32 %v2168_v47, %v3944_v42 }
 0x814   : > { %v2076_v49 = vsel %vm3992_vm8, %v3930_v52, %v2072_v19  ;;  %v2112_v36 = vadd.f32 %v3237_v41, %v2111_v53  ;;  %v2247_v5 = vmul.f32 2.1237322e-06, %v4006_v50  ;;  %v4015_v52 = vmul.f32 0.70710677, %v4009_v0 }
 0x815   : > { %v2178_v6 = vmul.f32 3.8918573e-05, %v3944_v42  ;;  %v2081_v30 = vsel %vm3983_vm7, %v2080_v44, %v2076_v49  ;;  %v2149_v9 = vmul.f32 %v3239_v1, %v3968_v16  ;;  %vm2153_vm13 = vweird.f32 %v3968_v16 }
 0x816   : > { %v2116_v8 = vsel %vm2115_vm12, %v3237_v41, %v2112_v36  ;;  %v2157_v10 = vand.u32 2147483647, %v3968_v16  ;;  %v2207_v24 = vmul.f32 2.1237322e-06, %v4004_v43  ;;  %v2248_v11 = vadd.f32 0.00028619796, %v2247_v5 }
 0x817   : > { %v2121_v46 = vsel %vm3997_vm11, %v2120_v39, %v2116_v8  ;;  %v2150_v2 = vsub.f32 1.0, %v2149_v9  ;;  %v2159_v20 = vand.u32 2147483648, %v3968_v16  ;;  %v2285_v13 = vmul.f32 %v4015_v52, %v4015_v52 }
 0x818   : > { %v2122_v62 = vmul.f32 %v2121_v46, %v2097_v54  ;;  %v2333_v14 = vmul.f32 %v2325_v29, %v3922_v45  ;;  %v2082_v41 = vmul.f32 %v2081_v30, %v3954_v59  ;;  %v2170_v15 = vadd.f32 0.0036580483, %v2169_v3 }
 0x819   : > { %v2179_v60 = vadd.f32 0.001143296, %v2178_v6  ;;  %v2151_v12 = vmul.f32 %v3239_v1, %v2150_v2  ;;  %vm2154_vm14 = vweird.f32 %v3239_v1  ;;  %v2258_v18 = vmul.f32 3.8918573e-05, %v4006_v50 }
 0x81a   : > { %v2991_v17 = vclamps-f32 %v2122_v62, 1.0  ;;  %vm4032_vm15 = vcmp.eq.f32.partialorder %v2157_v10, 8.507059e+37  ;;  %v2208_v21 = vadd.f32 0.00028619796, %v2207_v24  ;;  %v2249_v22 = vmul.f32 %v2248_v11, %v4006_v50  ;;  %vm2155_vm0 = vmor %vm2153_vm13, %vm2154_vm14 }
 0x81b   : > { %v2180_v23 = vmul.f32 %v2179_v60, %v3944_v42  ;;  %v2152_v45 = vadd.f32 %v3239_v1, %v2151_v12  ;;  %v4038_v28 = vmin.f32 %v2285_v13, 16.0  ;;  %v2259_v59 = vadd.f32 0.001143296, %v2258_v18 }
 0x81c   : > { %v2327_v61 = vadd.f32 1.0, %v2991_v17  ;;  %v2160_v31 = vor.u32 1.1754944e-38, %v2159_v20  ;;  %v2171_v32 = vmul.f32 %v2170_v15, %v3944_v42  ;;  %v2218_v38 = vmul.f32 3.8918573e-05, %v4004_v43 }
 0x81d   : > { %v2181_v34 = vadd.f32 0.014752088, %v2180_v23  ;;  %v2990_v44 = vclamps-f32 %v2082_v41, 1.0  ;;  %v2156_v47 = vsel %vm2155_vm0, %v3239_v1, %v2152_v45  ;;  %v2260_v51 = vmul.f32 %v2259_v59, %v4006_v50 }
 0x81e   : > { %v2335_v54 = vmul.f32 %v2327_v61, %v3950_v35  ;;  %v1990_v53 = vmul.f32 0.5, %v3825_v37  ;;  %v2161_v55 = vsel %vm4032_vm15, %v2160_v31, %v2156_v47  ;;  %v2209_v16 = vmul.f32 %v2208_v21, %v4004_v43 }
 0x81f   : > { %v2250_v49 = vadd.f32 0.0036580483, %v2249_v22  ;;  %v2162_v36 = vmul.f32 %v2161_v55, %v2137_v58  ;;  %v2287_v39 = vmul.f32 2.1237322e-06, %v4038_v28  ;;  %v2182_v3 = vmul.f32 %v2181_v34, %v3944_v42 }
 0x820   : > { %v2341_v29 = vpack.c.bf16 %v2335_v54, %v2333_v14  ;;  %v2172_v5 = vadd.f32 0.05243302, %v2171_v32  ;;  %v2261_v6 = vadd.f32 0.014752088, %v2260_v51  ;;  %v2219_v35 = vadd.f32 0.001143296, %v2218_v38 }
 0x821   : > { %v2326_v1 = vadd.f32 1.0, %v2990_v44  ;;  %v1992_v30 = vmul.f32 0.5, %v3847_v26  ;;  %v2992_v8 = vclamps-f32 %v2162_v36, 1.0  ;;  %v2183_v37 = vadd.f32 0.112945676, %v2182_v3 }
 0x822   : > { %2485 = vmatmul.bf16.vlgmr.msra.gmra.mxu3 %v2341_v29  ;;  %v2210_v9 = vadd.f32 0.0036580483, %v2209_v16  ;;  %v2251_v46 = vmul.f32 %v2250_v49, %v4006_v50  ;;  %v2262_v10 = vmul.f32 %v2261_v6, %v4006_v50  ;;  %v2220_v58 = vmul.f32 %v2219_v35, %v4004_v43 }
 0x823   : > { %v2328_v24 = vadd.f32 1.0, %v2992_v8  ;;  %v2288_v11 = vadd.f32 0.00028619796, %v2287_v39  ;;  %v2184_v62 = vmul.f32 %v2183_v37, %v3944_v42  ;;  %v2298_v2 = vmul.f32 3.8918573e-05, %v4038_v28 }
 0x824   : > { %v2173_v20 = vmul.f32 %v2172_v5, %v3944_v42  ;;  %v2263_v13 = vadd.f32 0.112945676, %v2262_v10  ;;  %v2221_v26 = vadd.f32 0.014752088, %v2220_v58  ;;  %v2334_v14 = vmul.f32 %v2326_v1, %v1990_v53 }
 0x825   : > { %v2336_v41 = vmul.f32 %v2328_v24, %v1992_v30  ;;  %v2185_v15 = vadd.f32 0.4994258, %v2184_v62  ;;  %v2299_v60 = vadd.f32 0.001143296, %v2298_v2  ;;  %v2211_v17 = vmul.f32 %v2210_v9, %v4004_v43 }
 0x826   : > { %v2252_v12 = vadd.f32 0.05243302, %v2251_v46  ;;  %v2264_v18 = vmul.f32 %v2263_v13, %v4006_v50  ;;  %v2222_v19 = vmul.f32 %v2221_v26, %v4004_v43  ;;  %v2289_v22 = vmul.f32 %v2288_v11, %v4038_v28 }
 0x827   : > { %v2342_v21 = vpack.c.bf16 %v2336_v41, %v2334_v14  ;;  %v2186_v23 = vmul.f32 %v2185_v15, %v3944_v42  ;;  %v2300_v61 = vmul.f32 %v2299_v60, %v4038_v28  ;;  %v2174_v31 = vadd.f32 0.18741608, %v2173_v20 }
 0x828   : > { %v2265_v45 = vadd.f32 0.4994258, %v2264_v18  ;;  %v2223_v59 = vadd.f32 0.112945676, %v2222_v19  ;;  %v2212_v38 = vadd.f32 0.05243302, %v2211_v17  ;;  %v2253_v47 = vmul.f32 %v2252_v12, %v4006_v50 }
 0x829   : > { %2504 = vmatmul.bf16.vlgmr.msrb.gmra.mxu0 %v2342_v21  ;;  %v2187_v32 = vadd.f32 1.0, %v2186_v23  ;;  %v2301_v34 = vadd.f32 0.014752088, %v2300_v61  ;;  %v2290_v51 = vadd.f32 0.0036580483, %v2289_v22  ;;  %v2175_v49 = vmul.f32 %v2174_v31, %v3944_v42 }
 0x82a   : > { %v2266_v44 = vmul.f32 %v2265_v45, %v4006_v50  ;;  %v2224_v54 = vmul.f32 %v2223_v59, %v4004_v43  ;;  %v2213_v29 = vmul.f32 %v2212_v38, %v4004_v43  ;;  %v2254_v36 = vadd.f32 0.18741608, %v2253_v47 }
 0x82b   : > { %3240 = vrcp.f32 %v2187_v32  ;;  %v2302_v16 = vmul.f32 %v2301_v34, %v4038_v28  ;;  %v2291_v39 = vmul.f32 %v2290_v51, %v4038_v28  ;;  %v2176_v35 = vadd.f32 1.1283791, %v2175_v49 }
 0x82c   : > { %v2267_v53 = vadd.f32 1.0, %v2266_v44  ;;  %v2225_v55 = vadd.f32 0.4994258, %v2224_v54  ;;  %v2214_v37 = vadd.f32 0.18741608, %v2213_v29  ;;  %v2255_v9 = vmul.f32 %v2254_v36, %v4006_v50 }
 0x82d   : > { %v2303_v5 = vadd.f32 0.112945676, %v2302_v16  ;;  %v2292_v42 = vadd.f32 0.05243302, %v2291_v39  ;;  %v2177_v24 = vmul.f32 %v2176_v35, %v3906_v4  ;;  %v2199_v11 = vand.u32 2147483648, %v2187_v32 }
 0x82e   : > { %3242 = vrcp.f32 %v2267_v53  ;;  %v2226_v3 = vmul.f32 %v2225_v55, %v4004_v43  ;;  %v2197_v20 = vand.u32 2147483647, %v2187_v32  ;;  %v2215_v26 = vmul.f32 %v2214_v37, %v4004_v43 }
 0x82f   : > { %v2304_v30 = vmul.f32 %v2303_v5, %v4038_v28  ;;  %v2256_v14 = vadd.f32 1.1283791, %v2255_v9  ;;  %v2293_v50 = vmul.f32 %v2292_v42, %v4038_v28  ;;  %vm2193_vm3 = vweird.f32 %v2187_v32 }
 0x830   : > { %v4073_v1 = vadd.f32 1.0, %v2226_v3  ;;  %v2279_v60 = vand.u32 2147483648, %v2267_v53  ;;  %v2200_v4 = vor.u32 1.1754944e-38, %v2199_v11  ;;  %v2277_v19 = vand.u32 2147483647, %v2267_v53 }
 0x831   : > { %v3241_v6 = vpop.eup %3240  ;;  %v2305_v58 = vadd.f32 0.4994258, %v2304_v30  ;;  %vm2198_vm6 = vcmp.eq.f32.partialorder %v2197_v20, 8.507059e+37  ;;  %v2257_v43 = vmul.f32 %v2256_v14, %v3964_v40  ;;  %vm2273_vm7 = vweird.f32 %v2267_v53 }
 0x832   : > { %v2189_v8 = vmul.f32 %v3241_v6, %v2187_v32  ;;  %3244 = vrcp.f32 %v4073_v1  ;;  %vm2194_vm2 = vweird.f32 %v3241_v6  ;;  %v2294_v45 = vadd.f32 0.18741608, %v2293_v50 }
 0x833   : > { %v2306_v13 = vmul.f32 %v2305_v58, %v4038_v28  ;;  %vm2195_vm4 = vmor %vm2193_vm3, %vm2194_vm2  ;;  %v2280_v31 = vor.u32 1.1754944e-38, %v2279_v60  ;;  %vm2278_vm9 = vcmp.eq.f32.partialorder %v2277_v19, 8.507059e+37  ;;  %v2237_v38 = vand.u32 2147483647, %v4073_v1 }
 0x834   : > { %v3243_v46 = vpop.eup %3242  ;;  %v2190_v10 = vsub.f32 1.0, %v2189_v8  ;;  %v2239_v44 = vand.u32 2147483648, %v4073_v1  ;;  %v2216_v55 = vadd.f32 1.1283791, %v2215_v26  ;;  %vm2233_vm11 = vweird.f32 %v4073_v1 }
 0x835   : > { %v2269_v62 = vmul.f32 %v3243_v46, %v2267_v53  ;;  %v4082_v17 = vadd.f32 1.0, %v2306_v13  ;;  %vm2274_vm5 = vweird.f32 %v3243_v46  ;;  %v2295_v53 = vmul.f32 %v2294_v45, %v4038_v28 }
 0x836   : > { %v2191_v2 = vmul.f32 %v3241_v6, %v2190_v10  ;;  %vm2275_vm8 = vmor %vm2273_vm7, %vm2274_vm5  ;;  %v2240_v39 = vor.u32 1.1754944e-38, %v2239_v44  ;;  %v1993_v5 = vmul.f32 0.5, %v3893_v7  ;;  %vm2238_vm13 = vcmp.eq.f32.partialorder %v2237_v38, 8.507059e+37 }
 0x837   : > { %v2270_v41 = vsub.f32 1.0, %v2269_v62  ;;  %3246 = vrcp.f32 %v4082_v17  ;;  %v2217_v30 = vmul.f32 %v2216_v55, %v3959_v56  ;;  %v2296_v9 = vadd.f32 1.1283791, %v2295_v53 }
 0x838   : > { %v2192_v15 = vadd.f32 %v3241_v6, %v2191_v2  ;;  %v3245_v12 = vpop.eup %3244  ;;  %v2319_v42 = vand.u32 2147483648, %v4082_v17  ;;  %vm2313_vm15 = vweird.f32 %v4082_v17  ;;  %v1994_v50 = vmul.f32 0.5, %v3934_v57 }
 0x839   : > { %v2271_v18 = vmul.f32 %v3243_v46, %v2270_v41  ;;  %v2229_v22 = vmul.f32 %v3245_v12, %v4073_v1  ;;  %vm2234_vm10 = vweird.f32 %v3245_v12  ;;  %v2317_v1 = vand.u32 2147483647, %v4082_v17 }
 0x83a   : > { %v2196_v21 = vsel %vm2195_vm4, %v3241_v6, %v2192_v15  ;;  %vm2235_vm12 = vmor %vm2233_vm11, %vm2234_vm10  ;;  %v1995_v6 = vmul.f32 0.5, %v3940_v63  ;;  %v2320_v63 = vor.u32 1.1754944e-38, %v2319_v42  ;;  %v2297_v56 = vmul.f32 %v2296_v9, %v4015_v52  ;;  %v3181_v52 = vld [vmem:[%s825_s3] ss:$0 sm:$0xff]  ;;  %s2531_s3 = sshll.u32 %s3305_s29, 4  ;;  %s2532_s3 = int_to_ptr.vmem [resolvable:$true] %s2531_s3 }
 0x83b   : > { %v2201_v23 = vsel %vm2198_vm6, %v2200_v4, %v2196_v21  ;;  %v2272_v61 = vadd.f32 %v3243_v46, %v2271_v18  ;;  %v2230_v32 = vsub.f32 1.0, %v2229_v22  ;;  %vm2318_vm2 = vcmp.eq.f32.partialorder %v2317_v1, 8.507059e+37 }
 0x83c   : > { %v2202_v59 = vmul.f32 %v2201_v23, %v2177_v24  ;;  %v1996_v41 = vmul.f32 0.5, %v4009_v0 }
 0x83d   : > { %v2276_v34 = vsel %vm2275_vm8, %v3243_v46, %v2272_v61  ;;  %v2231_v51 = vmul.f32 %v3245_v12, %v2230_v32  ;;  %v3247_v16 = vpop.eup %3246 }
 0x83e   : > { %v2993_v54 = vclamps-f32 %v2202_v59, 1.0  ;;  %v2281_v47 = vsel %vm2278_vm9, %v2280_v31, %v2276_v34  ;;  %v2309_v3 = vmul.f32 %v3247_v16, %v4082_v17  ;;  %vm2314_vm14 = vweird.f32 %v3247_v16 }
 0x83f   : > { %v2282_v40 = vmul.f32 %v2281_v47, %v2257_v43  ;;  %v2232_v49 = vadd.f32 %v3245_v12, %v2231_v51  ;;  %vm2315_vm0 = vmor %vm2313_vm15, %vm2314_vm14 }
 0x840   : > { %v2329_v36 = vadd.f32 1.0, %v2993_v54  ;;  %v2310_v28 = vsub.f32 1.0, %v2309_v3 }
 0x841   : > { %v2995_v29 = vclamps-f32 %v2282_v40, 1.0  ;;  %v2236_v35 = vsel %vm2235_vm12, %v3245_v12, %v2232_v49 }
 0x842   : > { %v2241_v37 = vsel %vm2238_vm13, %v2240_v39, %v2236_v35  ;;  %v2337_v46 = vmul.f32 %v2329_v36, %v1993_v5  ;;  %v2311_v24 = vmul.f32 %v3247_v16, %v2310_v28 }
 0x843   : > { %v2331_v8 = vadd.f32 1.0, %v2995_v29  ;;  %v2242_v58 = vmul.f32 %v2241_v37, %v2217_v30 }
 0x844   : > { %v2312_v11 = vadd.f32 %v3247_v16, %v2311_v24 }
 0x845   : > { %v2339_v10 = vmul.f32 %v2331_v8, %v1995_v6  ;;  %v2994_v62 = vclamps-f32 %v2242_v58, 1.0 }
 0x846   : > { %v2316_v2 = vsel %vm2315_vm0, %v3247_v16, %v2312_v11 }
 0x847   : > { %v2343_v7 = vpack.c.bf16 %v2339_v10, %v2337_v46  ;;  %v2321_v20 = vsel %vm2318_vm2, %v2320_v63, %v2316_v2  ;;  %v2330_v14 = vadd.f32 1.0, %v2994_v62 }
 0x848   : > { %v2322_v13 = vmul.f32 %v2321_v20, %v2297_v56 }
 0x849   : > { %2490 = vmatmul.bf16.gmra.mxu3 %v2343_v7  ;;  %v2338_v60 = vmul.f32 %v2330_v14, %v1994_v50 }
 0x84a   : > { %v2996_v26 = vclamps-f32 %v2322_v13, 1.0 }
 0x84c   : > { %v2332_v15 = vadd.f32 1.0, %v2996_v26 }
 0x84e   : > { %v2340_v17 = vmul.f32 %v2332_v15, %v1996_v41 }
 0x850   : > { %v2344_v12 = vpack.c.bf16 %v2340_v17, %v2338_v60 }
 0x852   : > { %2509 = vmatmul.bf16.gmra.mxu0 %v2344_v12 }
 0x8a5   : > { %v2486_v4 = vpop.f32.mrf.mxu3 }
 0x8a6   : > { %v2487_v18 = vadd.f32 %v3181_v52, %v2486_v4  ;;  %v2505_v19 = vpop.f32.mrf.mxu0 }
 0x8a8   : > { %v2506_v21 = vadd.f32 %v2505_v19, %v2487_v18 }
 0x8aa   : > { %v2515_v22 = vadd.f32 %v2506_v21, %v3720_v27 }
 0x8ac   : > { %2519 = vst.msk [vmem:[#allocation2] sm:$0xff] %vm858_vm1, %v2515_v22 }
 0x8ad   : > { %v2488_v57 = vpop.f32.mrf.mxu3 }
 0x8ae   : > { %v2489_v0 = vadd.f32 %v3181_v52, %v2488_v57  ;;  %v2507_v43 = vpop.f32.mrf.mxu0 }
 0x8b0   : > { %v2508_v23 = vadd.f32 %v2507_v43, %v2489_v0 }
 0x8b2   : > { %v2516_v61 = vadd.f32 %v2508_v23, %v3725_v33 }
 0x8b4   : > { %2520 = vst.msk [vmem:[#allocation2 + $0x8] sm:$0xff] %vm858_vm1, %v2516_v61 }
 0x8cc   : > { %v2491_v45 = vpop.f32.mrf.mxu3 }
 0x8cd   : > { %v2492_v59 = vadd.f32 %v3181_v52, %v2491_v45 }
 0x8cf   : > { %v2510_v31 = vpop.f32.mrf.mxu0 }
 0x8d0   : > { %v2511_v32 = vadd.f32 %v2510_v31, %v2492_v59 }
 0x8d2   : > { %v2517_v38 = vadd.f32 %v2511_v32, %v3730_v25 }
 0x8d4   : > { %v2493_v34 = vpop.f32.mrf.mxu3  ;;  %2521 = vst.msk [vmem:[#allocation2 + $0x10] sm:$0xff] %vm858_vm1, %v2517_v38 }
 0x8d5   : > { %v2494_v27 = vadd.f32 %v3181_v52, %v2493_v34 }
 0x8d7   : > { %v2512_v44 = vpop.f32.mrf.mxu0 }
 0x8d8   : > { %v2513_v33 = vadd.f32 %v2512_v44, %v2494_v27 }
 0x8da   : > { %v2518_v54 = vadd.f32 %v2513_v33, %v3735_v48 }
 0x8dc   : > { %2522 = vst.msk [vmem:[#allocation2 + $0x18] sm:$0xff] %vm858_vm1, %v2518_v54 }
 0x8dd   : > { %3137 = dma.vmem_to_hbm [thread:$0]  (%p3140_p6), %s2532_s3, 512, %s2534_s7, [#allocation3], %s3306_s19, %s3306_s19, %s3307_s18  }
 0x8de   : > { %3289 = dma.done.wait (%p3140_p6), [#allocation3], 512  }
 0x8df   : > { %3291 = vsyncadd (%p3140_p6), [#allocation3], 4294966784 }
 0x8e0 PF: > { %s4200_s22 = sld [smem:[#allocation7_spill]] }
 0x8e1   : > { %s4201_s24 = sld [smem:[#allocation6_spill]] }
 0x8e2   : > { %s4202_s25 = sld [smem:[#allocation8_spill]] }
 0x8e6   : > { %s28_s26 = sadd.s32 1, %s4200_s22  }
 0x8e7   : > { %p25_p7 = scmp.ge.s32.totalorder %s28_s26, 4  }
 0x8e9   :  { %27 = sbr.rel (!%p25_p7) target bundleno = 14 (0xe), region = 175 }
 0x8ee   :  { %2550 = vsyncpa [#allocation3], 1 }
 0x8ef   :  { %2552 = vsyncpa [#allocation3 + $0x1], 1 }

</bundles_post_ra>
